<compile_context>
chip_gen: v6e
topology: v6e:2x2x1
jax: 0.10.0
libtpu: 0.0.40
codegen_flags: <defaults>
</compile_context>

<pallas_src>
import math
import functools

import jax
import jax.numpy as jnp
from jax.experimental import pallas as pl
from jax.experimental.pallas import tpu as pltpu

SECTIONS = ["general", "intro", "method", "experiment", "relate"]
ETYPE_SECTIONS = ["intro", "method", "experiment", "relate"]

_ROW_TILE = 256                      # dst-row tile for the attention pass
_VMEM_LIMIT = 48 * 1024 * 1024       # < v7x 64 MiB physical; fine on v5e/v6e


# ----------------------------------------------------------------------------- layout
def _layout(n_hid):
    h2 = n_hid // 2
    dims = {s: (3 * h2 if s == "relate" else h2) for s in SECTIONS}
    offsets = {}
    off = 0
    for s in SECTIONS:
        offsets[s] = off
        off += dims[s]
    total = off                                      # 7 * h2
    lanes = max(128, ((total + 127) // 128) * 128)   # lane-dense, >=128
    return h2, dims, offsets, total, lanes


def _choose_n_pad(n):
    n_pad = ((n + 7) // 8) * 8
    if n_pad > _ROW_TILE:
        n_pad = ((n_pad + _ROW_TILE - 1) // _ROW_TILE) * _ROW_TILE
    return n_pad


# ----------------------------------------------------------------------------- kernels
def _kqv_kernel(x_ref, w_ref, b_ref, q_ref, kv_ref, *, lanes):
    """Block-diagonal q|k|v projection for one row tile (bf16 MXU, f32 acc)."""
    x = x_ref[...].astype(jnp.bfloat16)
    kqv = jnp.dot(x, w_ref[...], preferred_element_type=jnp.float32) + b_ref[...]
    q_ref[...] = kqv[:, :lanes].astype(jnp.bfloat16)
    kv_ref[...] = kqv[:, lanes:].astype(jnp.bfloat16)


def _attn_kernel(q_ref, kv_ref, x_ref, masks_ref, hascnt_ref, selmat_ref,
                 wa_ref, ba_ref, alpha_ref, o_ref, *, lanes, inv_sqrt_dk):
    """Per-etype masked attention + cross_reducer mean + skip-gated a_linear
    for one dst-row tile; the leading dim of size 2 is (regular, shuffled)."""
    f32, bf16 = jnp.float32, jnp.bfloat16

    q = q_ref[...].astype(f32)                    # [2, TM, L]
    k_all = kv_ref[:, :, :lanes]                  # [2, N,  L] bf16 (resident)
    v_all = kv_ref[:, :, lanes:]                  # [2, N,  L] bf16 (resident)
    x = x_ref[...]                                # [2, TM, L] f32
    hc = hascnt_ref[...]                          # [TM, 8]    f32
    selmat = selmat_ref[...]                      # [8, L]     f32
    n_rows = x.shape[1]

    col_gen = selmat[4:5][None]                   # [1, 1, L]  'general' lanes
    acc = jnp.zeros_like(x)                       # packed t_<sec> + sum of t_general

    for e in range(len(ETYPE_SECTIONS)):
        sel01 = selmat[e:e + 1][None]             # [1, 1, L]: lanes of cat(general, sec_e)
        # fold 1/sqrt_dk into the narrow [.,TM,L] operand (not the [.,TM,N] scores)
        q_e = (q * (sel01 * inv_sqrt_dk[e])).astype(bf16)
        # NOTE: canonical q.k^T orientation ('bqd,bkd->bqk'); if MLIR shows a
        # per-etype XLU transpose of k_all it should be hoisted before the loop.
        scores = jnp.einsum('bqd,bkd->bqk', q_e, k_all,
                            preferred_element_type=f32)          # [2, TM, N]
        mask = masks_ref[e].astype(f32)                           # [TM, N]  (int8 in HBM)
        scores = jnp.where((mask > 0.0)[None], scores, f32(-1e30))
        m = jnp.max(scores, axis=-1, keepdims=True)
        p = jnp.exp(scores - m)                   # masked entries underflow to exactly 0
        denom = jnp.sum(p, axis=-1, keepdims=True)
        att = (p * pl.reciprocal(denom, approx=True)).astype(bf16)
        h = jnp.einsum('bqk,bkd->bqd', att, v_all,
                       preferred_element_type=f32)                # [2, TM, L]
        has_e = hc[:, e:e + 1].reshape(1, n_rows, 1)              # 1 iff dst has in-edges
        acc = acc + h * (sel01 * has_e)

    # cross_reducer='mean' over etypes that delivered messages (general lanes only).
    inv_cnt = hc[:, 4:5].reshape(1, n_rows, 1)
    t = acc * (col_gen * inv_cnt + (1.0 - col_gen))

    # Skip-gated block-diagonal a_linear for all sections at once.
    t2 = t.reshape(2 * n_rows, lanes).astype(bf16)
    trans = jnp.dot(t2, wa_ref[...], preferred_element_type=f32)
    trans = trans.reshape(2, n_rows, lanes) + ba_ref[...][None]
    alpha = alpha_ref[...][None]                                  # [1, 1, L]
    o_ref[...] = trans * alpha + x * (1.0 - alpha)                # lane-dense store


# ----------------------------------------------------------------------------- params
def init_params(key, n_hid):
    h2 = n_hid // 2
    dims = {s: h2 for s in ["general", "intro", "method", "experiment"]}
    dims["relate"] = 3 * h2
    params = {}
    for s in SECTIONS:
        d = dims[s]
        bound = 1.0 / math.sqrt(d)
        for kind in ["k", "q", "v", "a"]:
            key, k1, k2 = jax.random.split(key, 3)
            w = jax.random.uniform(k1, (d, d), jnp.float32, -bound, bound)
            b = jax.random.uniform(k2, (d,), jnp.float32, -bound, bound)
            params[(kind, s)] = (w, b)
    params["skip"] = jnp.ones((5,), jnp.float32)   # nn.Parameter(torch.ones(5))
    return params, dims


def pack_params(params, n_hid, section_type2index):
    """Pack per-section weights into block-diagonal lane-dense slabs (once)."""
    h2, dims, offsets, total, lanes = _layout(n_hid)
    w_kqv = jnp.zeros((lanes, 3 * lanes), jnp.float32)     # column blocks: q | k | v
    b_kqv = jnp.zeros((1, 3 * lanes), jnp.float32)
    w_a = jnp.zeros((lanes, lanes), jnp.float32)
    b_a = jnp.zeros((1, lanes), jnp.float32)
    alpha = jnp.zeros((1, lanes), jnp.float32)
    for s in SECTIONS:
        off, d = offsets[s], dims[s]
        for j, kind in enumerate(["q", "k", "v"]):
            w, b = params[(kind, s)]
            w_kqv = w_kqv.at[off:off + d, j * lanes + off:j * lanes + off + d].set(w)
            b_kqv = b_kqv.at[0, j * lanes + off:j * lanes + off + d].set(b)
        wa, ba = params[("a", s)]
        w_a = w_a.at[off:off + d, off:off + d].set(wa)
        b_a = b_a.at[0, off:off + d].set(ba)
        a = jax.nn.sigmoid(params["skip"][section_type2index[s]])
        alpha = alpha.at[0, off:off + d].set(a)
    # selmat rows 0..3: 0/1 lane selector of cat(general, sec_e); row 4: general lanes.
    selmat = jnp.zeros((8, lanes), jnp.float32)
    for e, sec in enumerate(ETYPE_SECTIONS):
        off, d = offsets[sec], dims[sec]
        selmat = selmat.at[e, 0:h2].set(1.0)
        selmat = selmat.at[e, off:off + d].set(1.0)
    selmat = selmat.at[4, 0:h2].set(1.0)
    return {"w_kqv": w_kqv.astype(jnp.bfloat16), "b_kqv": b_kqv,
            "w_a": w_a.astype(jnp.bfloat16), "b_a": b_a,
            "alpha": alpha, "selmat": selmat}


def pack_graph(masks, n_nodes):
    """Graph-static preprocessing (do once): int8 stacked masks + per-dst
    has/count vectors for cross_reducer='mean'."""
    n_pad = _choose_n_pad(n_nodes)
    m = jnp.stack([masks[sec] for sec in ETYPE_SECTIONS]).astype(jnp.float32)
    m = jnp.pad(m, ((0, 0), (0, n_pad - n_nodes), (0, n_pad - n_nodes)))
    has = (jnp.sum(m, axis=-1) > 0).astype(jnp.float32)           # [4, n_pad]
    cnt = jnp.maximum(jnp.sum(has, axis=0), 1.0)                  # [n_pad]
    hascnt = jnp.zeros((n_pad, 8), jnp.float32)
    hascnt = hascnt.at[:, 0:4].set(has.T)
    hascnt = hascnt.at[:, 4].set(1.0 / cnt)
    return m.astype(jnp.int8), hascnt


# ----------------------------------------------------------------------------- forward
@functools.partial(jax.jit, static_argnums=(1,))
def hgt_layer_inter_forward(packed, n_hid, states, shuf_states, masks_i8, hascnt):
    h2, dims, offsets, total, lanes = _layout(n_hid)
    n = states["general"].shape[0]
    n_pad = masks_i8.shape[1]
    tm = n_pad if n_pad <= _ROW_TILE else _ROW_TILE

    # Pack (regular, shuffled) node states into one lane-dense [2, n_pad, lanes] slab.
    x = jnp.stack(
        [jnp.concatenate([states[s] for s in SECTIONS], axis=-1),
         jnp.concatenate([shuf_states[s] for s in SECTIONS], axis=-1)],
        axis=0).astype(jnp.float32)
    x = jnp.pad(x, ((0, 0), (0, n_pad - n), (0, lanes - total)))

    inv_sqrt_dk = tuple(
        1.0 / (math.sqrt(2 * n_hid) if sec == "relate" else math.sqrt(n_hid))
        for sec in ETYPE_SECTIONS)

    cparams = pltpu.CompilerParams(dimension_semantics=("parallel",),
                                   vmem_limit_bytes=_VMEM_LIMIT)

    # ---- stage 1: q/k/v projections (tiled rows, bf16 MXU, f32 accumulate) ----
    x2 = x.reshape(2 * n_pad, lanes)
    q2, kv2 = pl.pallas_call(
        functools.partial(_kqv_kernel, lanes=lanes),
        grid=(2 * n_pad // tm,),
        out_shape=(jax.ShapeDtypeStruct((2 * n_pad, lanes), jnp.bfloat16),
                   jax.ShapeDtypeStruct((2 * n_pad, 2 * lanes), jnp.bfloat16)),
        in_specs=[pl.BlockSpec((tm, lanes), lambda i: (i, 0)),
                  pl.BlockSpec((lanes, 3 * lanes), lambda i: (0, 0)),
                  pl.BlockSpec((1, 3 * lanes), lambda i: (0, 0))],
        out_specs=(pl.BlockSpec((tm, lanes), lambda i: (i, 0)),
                   pl.BlockSpec((tm, 2 * lanes), lambda i: (i, 0))),
        compiler_params=cparams,
    )(x2, packed["w_kqv"], packed["b_kqv"])
    q = q2.reshape(2, n_pad, lanes)
    kv = kv2.reshape(2, n_pad, 2 * lanes)

    # ---- stage 2: attention + cross-reduce + skip-gated output, dst-row tiled ----
    out = pl.pallas_call(
        functools.partial(_attn_kernel, lanes=lanes, inv_sqrt_dk=inv_sqrt_dk),
        grid=(n_pad // tm,),
        out_shape=jax.ShapeDtypeStruct((2, n_pad, lanes), jnp.float32),
        in_specs=[pl.BlockSpec((2, tm, lanes), lambda i: (0, i, 0)),        # q (row tile)
                  pl.BlockSpec((2, n_pad, 2 * lanes), lambda i: (0, 0, 0)),  # k|v resident
                  pl.BlockSpec((2, tm, lanes), lambda i: (0, i, 0)),         # x (skip)
                  pl.BlockSpec((4, tm, n_pad), lambda i: (0, i, 0)),         # int8 masks
                  pl.BlockSpec((tm, 8), lambda i: (i, 0)),                   # has/1_cnt
                  pl.BlockSpec((8, lanes), lambda i: (0, 0)),                # lane selectors
                  pl.BlockSpec((lanes, lanes), lambda i: (0, 0)),            # w_a (bf16)
                  pl.BlockSpec((1, lanes), lambda i: (0, 0)),                # b_a
                  pl.BlockSpec((1, lanes), lambda i: (0, 0))],               # alpha
        out_specs=pl.BlockSpec((2, tm, lanes), lambda i: (0, i, 0)),
        compiler_params=cparams,
    )(q, kv, x, masks_i8, hascnt, packed["selmat"],
      packed["w_a"], packed["b_a"], packed["alpha"])

    out_states, out_shuf_states = {}, {}
    for s in SECTIONS:
        off, d = offsets[s], dims[s]
        out_states[s] = out[0, :n, off:off + d]
        out_shuf_states[s] = out[1, :n, off:off + d]
    return out_states, out_shuf_states


# ----------------------------------------------------------------------------- reference
def reference_forward(params, n_hid, states, shuf_states, masks, section_type2index):
    """Pure-JAX f32 reference mirroring the PyTorch/DGL semantics with dense masks."""
    h2 = n_hid // 2
    sqrt_dk = {sec: (math.sqrt(2 * n_hid) if sec == "relate" else math.sqrt(n_hid))
               for sec in ETYPE_SECTIONS}
    n = states["general"].shape[0]

    def lin(xx, wb):
        w, b = wb
        return xx @ w + b

    proj = {}
    for s in SECTIONS:
        for kind in ["k", "q", "v"]:
            proj[(kind, "", s)] = lin(states[s], params[(kind, s)])
            proj[(kind, "shuf_", s)] = lin(shuf_states[s], params[(kind, s)])

    t_general, t_spec = {}, {}
    for prefix in ["", "shuf_"]:
        gen_sum = jnp.zeros((n, h2), jnp.float32)
        cnt = jnp.zeros((n, 1), jnp.float32)
        for sec in ETYPE_SECTIONS:
            q = jnp.concatenate([proj[("q", prefix, "general")], proj[("q", prefix, sec)]], -1)
            k = jnp.concatenate([proj[("k", prefix, "general")], proj[("k", prefix, sec)]], -1)
            v = jnp.concatenate([proj[("v", prefix, "general")], proj[("v", prefix, sec)]], -1)
            sc = (q @ k.T) / sqrt_dk[sec]
            mask = masks[sec]
            sc = jnp.where(mask > 0, sc, -1e30)
            att = jax.nn.softmax(sc, axis=-1)
            h = att @ v
            has = (jnp.sum(mask, -1, keepdims=True) > 0).astype(jnp.float32)
            gen_sum = gen_sum + h[:, :h2] * has
            cnt = cnt + has
            t_spec[(prefix, sec)] = h[:, h2:] * has
        t_general[prefix] = gen_sum / jnp.maximum(cnt, 1.0)

    out_states, out_shuf_states = {}, {}
    for s in SECTIONS:
        alpha = jax.nn.sigmoid(params["skip"][section_type2index[s]])
        w, b = params[("a", s)]
        t = t_general[""] if s == "general" else t_spec[("", s)]
        t_sh = t_general["shuf_"] if s == "general" else t_spec[("shuf_", s)]
        out_states[s] = (t @ w + b) * alpha + states[s] * (1.0 - alpha)
        out_shuf_states[s] = (t_sh @ w + b) * alpha + shuf_states[s] * (1.0 - alpha)
    return out_states, out_shuf_states


# ----------------------------------------------------------------------------- main
if __name__ == "__main__":
    n_hid = 32
    n_nodes = 8
    section_type2index = {
        "general": 0, "intro": 1, "method": 2, "experiment": 3, "relate": 4,
    }

    key = jax.random.PRNGKey(0)
    key, pkey = jax.random.split(key)
    params, dims = init_params(pkey, n_hid)

    states, shuf_states = {}, {}
    for s in SECTIONS:
        key, k1, k2 = jax.random.split(key, 3)
        states[s] = jax.random.normal(k1, (n_nodes, dims[s]), jnp.float32)
        shuf_states[s] = jax.random.normal(k2, (n_nodes, dims[s]), jnp.float32)

    # per-etype dense adjacency masks [dst, src]; ensure every dst has >=1 in-edge
    masks = {}
    eye = jnp.eye(n_nodes, dtype=jnp.float32)
    for sec in ETYPE_SECTIONS:
        key, mk = jax.random.split(key)
        rnd = (jax.random.uniform(mk, (n_nodes, n_nodes)) > 0.6).astype(jnp.float32)
        masks[sec] = jnp.maximum(rnd, eye)

    packed = pack_params(params, n_hid, section_type2index)
    masks_i8, hascnt = pack_graph(masks, n_nodes)   # graph-static, done once

    out_states, out_shuf_states = hgt_layer_inter_forward(
        packed, n_hid, states, shuf_states, masks_i8, hascnt)

    ref_states, ref_shuf_states = reference_forward(
        params, n_hid, states, shuf_states, masks, section_type2index)

    for s in SECTIONS:
        jax.block_until_ready(out_states[s])
        jax.block_until_ready(out_shuf_states[s])
        assert out_states[s].shape == (n_nodes, dims[s])
        assert bool(jnp.all(jnp.isfinite(out_states[s])))
        assert bool(jnp.all(jnp.isfinite(out_shuf_states[s])))
        err1 = float(jnp.max(jnp.abs(out_states[s] - ref_states[s])))
        err2 = float(jnp.max(jnp.abs(out_shuf_states[s] - ref_shuf_states[s])))
        assert err1 < 2e-2 and err2 < 2e-2, (s, err1, err2)

    print("KERNEL_OK")
</pallas_src>

<mosaic_0001>
module attributes {stable_mosaic.version = 11 : i64} {
  func.func @_kqv_kernel(%arg0: i32, %arg1: memref<8x128xf32, #tpu.memory_space<vmem>>, %arg2: memref<128x384xbf16, #tpu.memory_space<vmem>>, %arg3: memref<1x384xf32, #tpu.memory_space<vmem>>, %arg4: memref<8x128xbf16, #tpu.memory_space<vmem>>, %arg5: memref<8x256xbf16, #tpu.memory_space<vmem>>) attributes {dimension_semantics = [#tpu.dimension_semantics<parallel>], iteration_bounds = array<i64: 2>, scalar_prefetch = 0 : i64, scratch_operands = 0 : i64, tpu.core_type = #tpu.core_type<tc>, window_params = [{transform_indices = @transform_0, window_bounds = array<i64: 8, 128>}, {pipeline_mode = #tpu.pipeline_mode<synchronous>, transform_indices = @transform_1, window_bounds = array<i64: 128, 384>}, {pipeline_mode = #tpu.pipeline_mode<synchronous>, transform_indices = @transform_2, window_bounds = array<i64: 1, 384>}, {transform_indices = @transform_3, window_bounds = array<i64: 8, 128>}, {transform_indices = @transform_4, window_bounds = array<i64: 8, 256>}]} {
    %c0 = arith.constant 0 : index
    %c0_0 = arith.constant 0 : index
    %0 = vector.load %arg1[%c0, %c0_0] : memref<8x128xf32, #tpu.memory_space<vmem>>, vector<8x128xf32>
    %1 = arith.truncf %0 : vector<8x128xf32> to vector<8x128xbf16>
    %c0_1 = arith.constant 0 : index
    %c0_2 = arith.constant 0 : index
    %2 = vector.load %arg2[%c0_1, %c0_2] : memref<128x384xbf16, #tpu.memory_space<vmem>>, vector<128x384xbf16>
    %cst = arith.constant dense<0.000000e+00> : vector<8x384xf32>
    %3 = tpu.matmul %1, %2, %cst {dimension_numbers = #tpu.dot_dimension_numbers<[1], [0], [0], [1], [0, 0, 1, 1], [], []>} : vector<8x128xbf16>, vector<128x384xbf16>, vector<8x384xf32> -> vector<8x384xf32>
    %c0_3 = arith.constant 0 : index
    %c0_4 = arith.constant 0 : index
    %4 = vector.load %arg3[%c0_3, %c0_4] : memref<1x384xf32, #tpu.memory_space<vmem>>, vector<1x384xf32>
    %5 = vector.broadcast %4 : vector<1x384xf32> to vector<8x384xf32>
    %6 = arith.addf %3, %5 : vector<8x384xf32>
    %7 = vector.extract_strided_slice %6 {offsets = [0, 0], sizes = [8, 128], strides = [1, 1]} : vector<8x384xf32> to vector<8x128xf32>
    %8 = arith.truncf %7 : vector<8x128xf32> to vector<8x128xbf16>
    %c0_5 = arith.constant 0 : index
    %c0_6 = arith.constant 0 : index
    %9 = vector.load %arg4[%c0_5, %c0_6] : memref<8x128xbf16, #tpu.memory_space<vmem>>, vector<8x128xbf16>
    tpu.vector_store %arg4[%c0_5, %c0_6], %8 {strides = array<i32>} : memref<8x128xbf16, #tpu.memory_space<vmem>>, vector<8x128xbf16>,
    %10 = vector.extract_strided_slice %6 {offsets = [0, 128], sizes = [8, 256], strides = [1, 1]} : vector<8x384xf32> to vector<8x256xf32>
    %11 = arith.truncf %10 : vector<8x256xf32> to vector<8x256xbf16>
    %c0_7 = arith.constant 0 : index
    %c0_8 = arith.constant 0 : index
    %12 = vector.load %arg5[%c0_7, %c0_8] : memref<8x256xbf16, #tpu.memory_space<vmem>>, vector<8x256xbf16>
    tpu.vector_store %arg5[%c0_7, %c0_8], %11 {strides = array<i32>} : memref<8x256xbf16, #tpu.memory_space<vmem>>, vector<8x256xbf16>,
    return
  }
  func.func @transform_0(%arg0: i32) -> (i32, i32) {
    %c0_i32 = arith.constant 0 : i32
    %c0_i32_0 = arith.constant 0 : i32
    return %arg0, %c0_i32 : i32, i32
  }
  func.func @transform_1(%arg0: i32) -> (i32, i32) {
    %c0_i32 = arith.constant 0 : i32
    %c0_i32_0 = arith.constant 0 : i32
    %c0_i32_1 = arith.constant 0 : i32
    return %c0_i32, %c0_i32_0 : i32, i32
  }
  func.func @transform_2(%arg0: i32) -> (i32, i32) {
    %c0_i32 = arith.constant 0 : i32
    %c0_i32_0 = arith.constant 0 : i32
    %c0_i32_1 = arith.constant 0 : i32
    return %c0_i32, %c0_i32_0 : i32, i32
  }
  func.func @transform_3(%arg0: i32) -> (i32, i32) {
    %c0_i32 = arith.constant 0 : i32
    %c0_i32_0 = arith.constant 0 : i32
    return %arg0, %c0_i32 : i32, i32
  }
  func.func @transform_4(%arg0: i32) -> (i32, i32) {
    %c0_i32 = arith.constant 0 : i32
    %c0_i32_0 = arith.constant 0 : i32
    return %arg0, %c0_i32 : i32, i32
  }
}

module attributes {stable_mosaic.version = 11 : i64} {
  func.func @_attn_kernel(%arg0: i32, %arg1: memref<2x8x128xbf16, #tpu.memory_space<vmem>>, %arg2: memref<2x8x256xbf16, #tpu.memory_space<vmem>>, %arg3: memref<2x8x128xf32, #tpu.memory_space<vmem>>, %arg4: memref<4x8x8xi8, #tpu.memory_space<vmem>>, %arg5: memref<8x8xf32, #tpu.memory_space<vmem>>, %arg6: memref<8x128xf32, #tpu.memory_space<vmem>>, %arg7: memref<128x128xbf16, #tpu.memory_space<vmem>>, %arg8: memref<1x128xf32, #tpu.memory_space<vmem>>, %arg9: memref<1x128xf32, #tpu.memory_space<vmem>>, %arg10: memref<2x8x128xf32, #tpu.memory_space<vmem>>) attributes {dimension_semantics = [#tpu.dimension_semantics<parallel>], iteration_bounds = array<i64: 1>, scalar_prefetch = 0 : i64, scratch_operands = 0 : i64, tpu.core_type = #tpu.core_type<tc>, window_params = [{transform_indices = @transform_0, window_bounds = array<i64: 2, 8, 128>}, {pipeline_mode = #tpu.pipeline_mode<synchronous>, transform_indices = @transform_1, window_bounds = array<i64: 2, 8, 256>}, {transform_indices = @transform_2, window_bounds = array<i64: 2, 8, 128>}, {transform_indices = @transform_3, window_bounds = array<i64: 4, 8, 8>}, {transform_indices = @transform_4, window_bounds = array<i64: 8, 8>}, {pipeline_mode = #tpu.pipeline_mode<synchronous>, transform_indices = @transform_5, window_bounds = array<i64: 8, 128>}, {pipeline_mode = #tpu.pipeline_mode<synchronous>, transform_indices = @transform_6, window_bounds = array<i64: 128, 128>}, {pipeline_mode = #tpu.pipeline_mode<synchronous>, transform_indices = @transform_7, window_bounds = array<i64: 1, 128>}, {pipeline_mode = #tpu.pipeline_mode<synchronous>, transform_indices = @transform_8, window_bounds = array<i64: 1, 128>}, {transform_indices = @transform_9, window_bounds = array<i64: 2, 8, 128>}]} {
    %c0 = arith.constant 0 : index
    %c0_0 = arith.constant 0 : index
    %c0_1 = arith.constant 0 : index
    %0 = vector.load %arg1[%c0, %c0_0, %c0_1] : memref<2x8x128xbf16, #tpu.memory_space<vmem>>, vector<2x8x128xbf16>
    %1 = arith.extf %0 : vector<2x8x128xbf16> to vector<2x8x128xf32>
    %c0_2 = arith.constant 0 : index
    %c0_3 = arith.constant 0 : index
    %c0_4 = arith.constant 0 : index
    %2 = vector.load %arg2[%c0_2, %c0_3, %c0_4] : memref<2x8x256xbf16, #tpu.memory_space<vmem>>, vector<2x8x128xbf16>
    %c0_5 = arith.constant 0 : index
    %c0_6 = arith.constant 0 : index
    %c128 = arith.constant 128 : index
    %3 = vector.load %arg2[%c0_5, %c0_6, %c128] : memref<2x8x256xbf16, #tpu.memory_space<vmem>>, vector<2x8x128xbf16>
    %c0_7 = arith.constant 0 : index
    %c0_8 = arith.constant 0 : index
    %c0_9 = arith.constant 0 : index
    %4 = vector.load %arg3[%c0_7, %c0_8, %c0_9] : memref<2x8x128xf32, #tpu.memory_space<vmem>>, vector<2x8x128xf32>
    %c0_10 = arith.constant 0 : index
    %c0_11 = arith.constant 0 : index
    %5 = vector.load %arg5[%c0_10, %c0_11] : memref<8x8xf32, #tpu.memory_space<vmem>>, vector<8x8xf32>
    %c0_12 = arith.constant 0 : index
    %c0_13 = arith.constant 0 : index
    %6 = vector.load %arg6[%c0_12, %c0_13] : memref<8x128xf32, #tpu.memory_space<vmem>>, vector<8x128xf32>
    %7 = vector.extract_strided_slice %6 {offsets = [4, 0], sizes = [1, 128], strides = [1, 1]} : vector<8x128xf32> to vector<1x128xf32>
    %8 = vector.shape_cast %7 : vector<1x128xf32> to vector<1x1x128xf32>
    %cst = arith.constant 0.000000e+00 : f32
    %9 = vector.broadcast %cst : f32 to vector<2x8x128xf32>
    %10 = vector.extract_strided_slice %6 {offsets = [0, 0], sizes = [1, 128], strides = [1, 1]} : vector<8x128xf32> to vector<1x128xf32>
    %11 = vector.shape_cast %10 : vector<1x128xf32> to vector<1x1x128xf32>
    %cst_14 = arith.constant 0.176776692 : f32
    %12 = vector.broadcast %cst_14 : f32 to vector<1x1x128xf32>
    %13 = arith.mulf %11, %12 : vector<1x1x128xf32>
    %14 = vector.broadcast %13 : vector<1x1x128xf32> to vector<2x8x128xf32>
    %15 = arith.mulf %1, %14 : vector<2x8x128xf32>
    %16 = arith.truncf %15 : vector<2x8x128xf32> to vector<2x8x128xbf16>
    "tpu.trace_start"() <{level = 10 : i32, message = "bqd,bkd->bqk"}> : () -> ()
    %cst_15 = arith.constant dense<0.000000e+00> : vector<2x8x8xf32>
    %17 = tpu.matmul %16, %2, %cst_15 {dimension_numbers = #tpu.dot_dimension_numbers<[2], [2], [1], [1], [0, 0, 0, 1, 1, 1], [0], [0]>} : vector<2x8x128xbf16>, vector<2x8x128xbf16>, vector<2x8x8xf32> -> vector<2x8x8xf32>
    "tpu.trace_stop"() : () -> ()
    %c0_16 = arith.constant 0 : index
    %c0_17 = arith.constant 0 : index
    %c0_18 = arith.constant 0 : index
    %18 = vector.load %arg4[%c0_16, %c0_17, %c0_18] : memref<4x8x8xi8, #tpu.memory_space<vmem>>, vector<1x8x8xi8>
    %19 = vector.shape_cast %18 : vector<1x8x8xi8> to vector<8x8xi8>
    %20 = arith.sitofp %19 : vector<8x8xi8> to vector<8x8xf32>
    %cst_19 = arith.constant 0.000000e+00 : f32
    %21 = vector.broadcast %cst_19 : f32 to vector<8x8xf32>
    %22 = arith.cmpf ogt, %20, %21 : vector<8x8xf32>
    %23 = vector.shape_cast %22 : vector<8x8xi1> to vector<1x8x8xi1>
    %cst_20 = arith.constant -1.000000e+30 : f32
    %24 = vector.shape_cast %23 : vector<1x8x8xi1> to vector<1x8x8xi1>
    %25 = vector.broadcast %24 : vector<1x8x8xi1> to vector<2x8x8xi1>
    %26 = vector.broadcast %cst_20 : f32 to vector<2x8x8xf32>
    %27 = arith.select %25, %17, %26 : vector<2x8x8xi1>, vector<2x8x8xf32>
    %cst_21 = arith.constant dense<0xFF800000> : vector<2x8xf32>
    %28 = vector.multi_reduction <maximumf>, %27, %cst_21 [2] : vector<2x8x8xf32> to vector<2x8xf32>
    %29 = vector.shape_cast %28 : vector<2x8xf32> to vector<2x8x1xf32>
    %30 = vector.broadcast %29 : vector<2x8x1xf32> to vector<2x8x8xf32>
    %31 = arith.subf %27, %30 : vector<2x8x8xf32>
    %32 = math.exp %31 : vector<2x8x8xf32>
    %cst_22 = arith.constant dense<0.000000e+00> : vector<2x8xf32>
    %33 = vector.multi_reduction <add>, %32, %cst_22 [2] : vector<2x8x8xf32> to vector<2x8xf32>
    %34 = vector.shape_cast %33 : vector<2x8xf32> to vector<2x8x1xf32>
    %35 = tpu.reciprocal %34 {approx = true} : vector<2x8x1xf32> -> vector<2x8x1xf32>
    %36 = vector.broadcast %35 : vector<2x8x1xf32> to vector<2x8x8xf32>
    %37 = arith.mulf %32, %36 : vector<2x8x8xf32>
    %38 = arith.truncf %37 : vector<2x8x8xf32> to vector<2x8x8xbf16>
    "tpu.trace_start"() <{level = 10 : i32, message = "bqk,bkd->bqd"}> : () -> ()
    %cst_23 = arith.constant dense<0.000000e+00> : vector<2x8x128xf32>
    %39 = tpu.matmul %38, %3, %cst_23 {dimension_numbers = #tpu.dot_dimension_numbers<[2], [1], [1], [2], [0, 0, 0, 1, 1, 2], [0], [0]>} : vector<2x8x8xbf16>, vector<2x8x128xbf16>, vector<2x8x128xf32> -> vector<2x8x128xf32>
    "tpu.trace_stop"() : () -> ()
    %40 = vector.extract_strided_slice %5 {offsets = [0, 0], sizes = [8, 1], strides = [1, 1]} : vector<8x8xf32> to vector<8x1xf32>
    %41 = vector.shape_cast %40 : vector<8x1xf32> to vector<1x8x1xf32>
    %42 = vector.broadcast %11 : vector<1x1x128xf32> to vector<1x8x128xf32>
    %43 = vector.broadcast %41 : vector<1x8x1xf32> to vector<1x8x128xf32>
    %44 = arith.mulf %42, %43 : vector<1x8x128xf32>
    %45 = vector.broadcast %44 : vector<1x8x128xf32> to vector<2x8x128xf32>
    %46 = arith.mulf %39, %45 : vector<2x8x128xf32>
    %47 = arith.addf %9, %46 : vector<2x8x128xf32>
    %48 = vector.extract_strided_slice %6 {offsets = [1, 0], sizes = [1, 128], strides = [1, 1]} : vector<8x128xf32> to vector<1x128xf32>
    %49 = vector.shape_cast %48 : vector<1x128xf32> to vector<1x1x128xf32>
    %cst_24 = arith.constant 0.176776692 : f32
    %50 = vector.broadcast %cst_24 : f32 to vector<1x1x128xf32>
    %51 = arith.mulf %49, %50 : vector<1x1x128xf32>
    %52 = vector.broadcast %51 : vector<1x1x128xf32> to vector<2x8x128xf32>
    %53 = arith.mulf %1, %52 : vector<2x8x128xf32>
    %54 = arith.truncf %53 : vector<2x8x128xf32> to vector<2x8x128xbf16>
    "tpu.trace_start"() <{level = 10 : i32, message = "bqd,bkd->bqk"}> : () -> ()
    %cst_25 = arith.constant dense<0.000000e+00> : vector<2x8x8xf32>
    %55 = tpu.matmul %54, %2, %cst_25 {dimension_numbers = #tpu.dot_dimension_numbers<[2], [2], [1], [1], [0, 0, 0, 1, 1, 1], [0], [0]>} : vector<2x8x128xbf16>, vector<2x8x128xbf16>, vector<2x8x8xf32> -> vector<2x8x8xf32>
    "tpu.trace_stop"() : () -> ()
    %c1 = arith.constant 1 : index
    %c0_26 = arith.constant 0 : index
    %c0_27 = arith.constant 0 : index
    %56 = vector.load %arg4[%c1, %c0_26, %c0_27] : memref<4x8x8xi8, #tpu.memory_space<vmem>>, vector<1x8x8xi8>
    %57 = vector.shape_cast %56 : vector<1x8x8xi8> to vector<8x8xi8>
    %58 = arith.sitofp %57 : vector<8x8xi8> to vector<8x8xf32>
    %cst_28 = arith.constant 0.000000e+00 : f32
    %59 = vector.broadcast %cst_28 : f32 to vector<8x8xf32>
    %60 = arith.cmpf ogt, %58, %59 : vector<8x8xf32>
    %61 = vector.shape_cast %60 : vector<8x8xi1> to vector<1x8x8xi1>
    %cst_29 = arith.constant -1.000000e+30 : f32
    %62 = vector.shape_cast %61 : vector<1x8x8xi1> to vector<1x8x8xi1>
    %63 = vector.broadcast %62 : vector<1x8x8xi1> to vector<2x8x8xi1>
    %64 = vector.broadcast %cst_29 : f32 to vector<2x8x8xf32>
    %65 = arith.select %63, %55, %64 : vector<2x8x8xi1>, vector<2x8x8xf32>
    %cst_30 = arith.constant dense<0xFF800000> : vector<2x8xf32>
    %66 = vector.multi_reduction <maximumf>, %65, %cst_30 [2] : vector<2x8x8xf32> to vector<2x8xf32>
    %67 = vector.shape_cast %66 : vector<2x8xf32> to vector<2x8x1xf32>
    %68 = vector.broadcast %67 : vector<2x8x1xf32> to vector<2x8x8xf32>
    %69 = arith.subf %65, %68 : vector<2x8x8xf32>
    %70 = math.exp %69 : vector<2x8x8xf32>
    %cst_31 = arith.constant dense<0.000000e+00> : vector<2x8xf32>
    %71 = vector.multi_reduction <add>, %70, %cst_31 [2] : vector<2x8x8xf32> to vector<2x8xf32>
    %72 = vector.shape_cast %71 : vector<2x8xf32> to vector<2x8x1xf32>
    %73 = tpu.reciprocal %72 {approx = true} : vector<2x8x1xf32> -> vector<2x8x1xf32>
    %74 = vector.broadcast %73 : vector<2x8x1xf32> to vector<2x8x8xf32>
    %75 = arith.mulf %70, %74 : vector<2x8x8xf32>
    %76 = arith.truncf %75 : vector<2x8x8xf32> to vector<2x8x8xbf16>
    "tpu.trace_start"() <{level = 10 : i32, message = "bqk,bkd->bqd"}> : () -> ()
    %cst_32 = arith.constant dense<0.000000e+00> : vector<2x8x128xf32>
    %77 = tpu.matmul %76, %3, %cst_32 {dimension_numbers = #tpu.dot_dimension_numbers<[2], [1], [1], [2], [0, 0, 0, 1, 1, 2], [0], [0]>} : vector<2x8x8xbf16>, vector<2x8x128xbf16>, vector<2x8x128xf32> -> vector<2x8x128xf32>
    "tpu.trace_stop"() : () -> ()
    %78 = vector.extract_strided_slice %5 {offsets = [0, 1], sizes = [8, 1], strides = [1, 1]} : vector<8x8xf32> to vector<8x1xf32>
    %79 = vector.shape_cast %78 : vector<8x1xf32> to vector<1x8x1xf32>
    %80 = vector.broadcast %49 : vector<1x1x128xf32> to vector<1x8x128xf32>
    %81 = vector.broadcast %79 : vector<1x8x1xf32> to vector<1x8x128xf32>
    %82 = arith.mulf %80, %81 : vector<1x8x128xf32>
    %83 = vector.broadcast %82 : vector<1x8x128xf32> to vector<2x8x128xf32>
    %84 = arith.mulf %77, %83 : vector<2x8x128xf32>
    %85 = arith.addf %47, %84 : vector<2x8x128xf32>
    %86 = vector.extract_strided_slice %6 {offsets = [2, 0], sizes = [1, 128], strides = [1, 1]} : vector<8x128xf32> to vector<1x128xf32>
    %87 = vector.shape_cast %86 : vector<1x128xf32> to vector<1x1x128xf32>
    %cst_33 = arith.constant 0.176776692 : f32
    %88 = vector.broadcast %cst_33 : f32 to vector<1x1x128xf32>
    %89 = arith.mulf %87, %88 : vector<1x1x128xf32>
    %90 = vector.broadcast %89 : vector<1x1x128xf32> to vector<2x8x128xf32>
    %91 = arith.mulf %1, %90 : vector<2x8x128xf32>
    %92 = arith.truncf %91 : vector<2x8x128xf32> to vector<2x8x128xbf16>
    "tpu.trace_start"() <{level = 10 : i32, message = "bqd,bkd->bqk"}> : () -> ()
    %cst_34 = arith.constant dense<0.000000e+00> : vector<2x8x8xf32>
    %93 = tpu.matmul %92, %2, %cst_34 {dimension_numbers = #tpu.dot_dimension_numbers<[2], [2], [1], [1], [0, 0, 0, 1, 1, 1], [0], [0]>} : vector<2x8x128xbf16>, vector<2x8x128xbf16>, vector<2x8x8xf32> -> vector<2x8x8xf32>
    "tpu.trace_stop"() : () -> ()
    %c2 = arith.constant 2 : index
    %c0_35 = arith.constant 0 : index
    %c0_36 = arith.constant 0 : index
    %94 = vector.load %arg4[%c2, %c0_35, %c0_36] : memref<4x8x8xi8, #tpu.memory_space<vmem>>, vector<1x8x8xi8>
    %95 = vector.shape_cast %94 : vector<1x8x8xi8> to vector<8x8xi8>
    %96 = arith.sitofp %95 : vector<8x8xi8> to vector<8x8xf32>
    %cst_37 = arith.constant 0.000000e+00 : f32
    %97 = vector.broadcast %cst_37 : f32 to vector<8x8xf32>
    %98 = arith.cmpf ogt, %96, %97 : vector<8x8xf32>
    %99 = vector.shape_cast %98 : vector<8x8xi1> to vector<1x8x8xi1>
    %cst_38 = arith.constant -1.000000e+30 : f32
    %100 = vector.shape_cast %99 : vector<1x8x8xi1> to vector<1x8x8xi1>
    %101 = vector.broadcast %100 : vector<1x8x8xi1> to vector<2x8x8xi1>
    %102 = vector.broadcast %cst_38 : f32 to vector<2x8x8xf32>
    %103 = arith.select %101, %93, %102 : vector<2x8x8xi1>, vector<2x8x8xf32>
    %cst_39 = arith.constant dense<0xFF800000> : vector<2x8xf32>
    %104 = vector.multi_reduction <maximumf>, %103, %cst_39 [2] : vector<2x8x8xf32> to vector<2x8xf32>
    %105 = vector.shape_cast %104 : vector<2x8xf32> to vector<2x8x1xf32>
    %106 = vector.broadcast %105 : vector<2x8x1xf32> to vector<2x8x8xf32>
    %107 = arith.subf %103, %106 : vector<2x8x8xf32>
    %108 = math.exp %107 : vector<2x8x8xf32>
    %cst_40 = arith.constant dense<0.000000e+00> : vector<2x8xf32>
    %109 = vector.multi_reduction <add>, %108, %cst_40 [2] : vector<2x8x8xf32> to vector<2x8xf32>
    %110 = vector.shape_cast %109 : vector<2x8xf32> to vector<2x8x1xf32>
    %111 = tpu.reciprocal %110 {approx = true} : vector<2x8x1xf32> -> vector<2x8x1xf32>
    %112 = vector.broadcast %111 : vector<2x8x1xf32> to vector<2x8x8xf32>
    %113 = arith.mulf %108, %112 : vector<2x8x8xf32>
    %114 = arith.truncf %113 : vector<2x8x8xf32> to vector<2x8x8xbf16>
    "tpu.trace_start"() <{level = 10 : i32, message = "bqk,bkd->bqd"}> : () -> ()
    %cst_41 = arith.constant dense<0.000000e+00> : vector<2x8x128xf32>
    %115 = tpu.matmul %114, %3, %cst_41 {dimension_numbers = #tpu.dot_dimension_numbers<[2], [1], [1], [2], [0, 0, 0, 1, 1, 2], [0], [0]>} : vector<2x8x8xbf16>, vector<2x8x128xbf16>, vector<2x8x128xf32> -> vector<2x8x128xf32>
    "tpu.trace_stop"() : () -> ()
    %116 = vector.extract_strided_slice %5 {offsets = [0, 2], sizes = [8, 1], strides = [1, 1]} : vector<8x8xf32> to vector<8x1xf32>
    %117 = vector.shape_cast %116 : vector<8x1xf32> to vector<1x8x1xf32>
    %118 = vector.broadcast %87 : vector<1x1x128xf32> to vector<1x8x128xf32>
    %119 = vector.broadcast %117 : vector<1x8x1xf32> to vector<1x8x128xf32>
    %120 = arith.mulf %118, %119 : vector<1x8x128xf32>
    %121 = vector.broadcast %120 : vector<1x8x128xf32> to vector<2x8x128xf32>
    %122 = arith.mulf %115, %121 : vector<2x8x128xf32>
    %123 = arith.addf %85, %122 : vector<2x8x128xf32>
    %124 = vector.extract_strided_slice %6 {offsets = [3, 0], sizes = [1, 128], strides = [1, 1]} : vector<8x128xf32> to vector<1x128xf32>
    %125 = vector.shape_cast %124 : vector<1x128xf32> to vector<1x1x128xf32>
    %cst_42 = arith.constant 1.250000e-01 : f32
    %126 = vector.broadcast %cst_42 : f32 to vector<1x1x128xf32>
    %127 = arith.mulf %125, %126 : vector<1x1x128xf32>
    %128 = vector.broadcast %127 : vector<1x1x128xf32> to vector<2x8x128xf32>
    %129 = arith.mulf %1, %128 : vector<2x8x128xf32>
    %130 = arith.truncf %129 : vector<2x8x128xf32> to vector<2x8x128xbf16>
    "tpu.trace_start"() <{level = 10 : i32, message = "bqd,bkd->bqk"}> : () -> ()
    %cst_43 = arith.constant dense<0.000000e+00> : vector<2x8x8xf32>
    %131 = tpu.matmul %130, %2, %cst_43 {dimension_numbers = #tpu.dot_dimension_numbers<[2], [2], [1], [1], [0, 0, 0, 1, 1, 1], [0], [0]>} : vector<2x8x128xbf16>, vector<2x8x128xbf16>, vector<2x8x8xf32> -> vector<2x8x8xf32>
    "tpu.trace_stop"() : () -> ()
    %c3 = arith.constant 3 : index
    %c0_44 = arith.constant 0 : index
    %c0_45 = arith.constant 0 : index
    %132 = vector.load %arg4[%c3, %c0_44, %c0_45] : memref<4x8x8xi8, #tpu.memory_space<vmem>>, vector<1x8x8xi8>
    %133 = vector.shape_cast %132 : vector<1x8x8xi8> to vector<8x8xi8>
    %134 = arith.sitofp %133 : vector<8x8xi8> to vector<8x8xf32>
    %cst_46 = arith.constant 0.000000e+00 : f32
    %135 = vector.broadcast %cst_46 : f32 to vector<8x8xf32>
    %136 = arith.cmpf ogt, %134, %135 : vector<8x8xf32>
    %137 = vector.shape_cast %136 : vector<8x8xi1> to vector<1x8x8xi1>
    %cst_47 = arith.constant -1.000000e+30 : f32
    %138 = vector.shape_cast %137 : vector<1x8x8xi1> to vector<1x8x8xi1>
    %139 = vector.broadcast %138 : vector<1x8x8xi1> to vector<2x8x8xi1>
    %140 = vector.broadcast %cst_47 : f32 to vector<2x8x8xf32>
    %141 = arith.select %139, %131, %140 : vector<2x8x8xi1>, vector<2x8x8xf32>
    %cst_48 = arith.constant dense<0xFF800000> : vector<2x8xf32>
    %142 = vector.multi_reduction <maximumf>, %141, %cst_48 [2] : vector<2x8x8xf32> to vector<2x8xf32>
    %143 = vector.shape_cast %142 : vector<2x8xf32> to vector<2x8x1xf32>
    %144 = vector.broadcast %143 : vector<2x8x1xf32> to vector<2x8x8xf32>
    %145 = arith.subf %141, %144 : vector<2x8x8xf32>
    %146 = math.exp %145 : vector<2x8x8xf32>
    %cst_49 = arith.constant dense<0.000000e+00> : vector<2x8xf32>
    %147 = vector.multi_reduction <add>, %146, %cst_49 [2] : vector<2x8x8xf32> to vector<2x8xf32>
    %148 = vector.shape_cast %147 : vector<2x8xf32> to vector<2x8x1xf32>
    %149 = tpu.reciprocal %148 {approx = true} : vector<2x8x1xf32> -> vector<2x8x1xf32>
    %150 = vector.broadcast %149 : vector<2x8x1xf32> to vector<2x8x8xf32>
    %151 = arith.mulf %146, %150 : vector<2x8x8xf32>
    %152 = arith.truncf %151 : vector<2x8x8xf32> to vector<2x8x8xbf16>
    "tpu.trace_start"() <{level = 10 : i32, message = "bqk,bkd->bqd"}> : () -> ()
    %cst_50 = arith.constant dense<0.000000e+00> : vector<2x8x128xf32>
    %153 = tpu.matmul %152, %3, %cst_50 {dimension_numbers = #tpu.dot_dimension_numbers<[2], [1], [1], [2], [0, 0, 0, 1, 1, 2], [0], [0]>} : vector<2x8x8xbf16>, vector<2x8x128xbf16>, vector<2x8x128xf32> -> vector<2x8x128xf32>
    "tpu.trace_stop"() : () -> ()
    %154 = vector.extract_strided_slice %5 {offsets = [0, 3], sizes = [8, 1], strides = [1, 1]} : vector<8x8xf32> to vector<8x1xf32>
    %155 = vector.shape_cast %154 : vector<8x1xf32> to vector<1x8x1xf32>
    %156 = vector.broadcast %125 : vector<1x1x128xf32> to vector<1x8x128xf32>
    %157 = vector.broadcast %155 : vector<1x8x1xf32> to vector<1x8x128xf32>
    %158 = arith.mulf %156, %157 : vector<1x8x128xf32>
    %159 = vector.broadcast %158 : vector<1x8x128xf32> to vector<2x8x128xf32>
    %160 = arith.mulf %153, %159 : vector<2x8x128xf32>
    %161 = arith.addf %123, %160 : vector<2x8x128xf32>
    %162 = vector.extract_strided_slice %5 {offsets = [0, 4], sizes = [8, 1], strides = [1, 1]} : vector<8x8xf32> to vector<8x1xf32>
    %163 = vector.shape_cast %162 : vector<8x1xf32> to vector<1x8x1xf32>
    %164 = vector.broadcast %8 : vector<1x1x128xf32> to vector<1x8x128xf32>
    %165 = vector.broadcast %163 : vector<1x8x1xf32> to vector<1x8x128xf32>
    %166 = arith.mulf %164, %165 : vector<1x8x128xf32>
    %cst_51 = arith.constant 1.000000e+00 : f32
    %167 = vector.broadcast %cst_51 : f32 to vector<1x1x128xf32>
    %168 = arith.subf %167, %8 : vector<1x1x128xf32>
    %169 = vector.broadcast %168 : vector<1x1x128xf32> to vector<1x8x128xf32>
    %170 = arith.addf %166, %169 : vector<1x8x128xf32>
    %171 = vector.broadcast %170 : vector<1x8x128xf32> to vector<2x8x128xf32>
    %172 = arith.mulf %161, %171 : vector<2x8x128xf32>
    %173 = vector.shape_cast %172 : vector<2x8x128xf32> to vector<16x128xf32>
    %174 = arith.truncf %173 : vector<16x128xf32> to vector<16x128xbf16>
    %c0_52 = arith.constant 0 : index
    %c0_53 = arith.constant 0 : index
    %175 = vector.load %arg7[%c0_52, %c0_53] : memref<128x128xbf16, #tpu.memory_space<vmem>>, vector<128x128xbf16>
    %cst_54 = arith.constant dense<0.000000e+00> : vector<16x128xf32>
    %176 = tpu.matmul %174, %175, %cst_54 {dimension_numbers = #tpu.dot_dimension_numbers<[1], [0], [0], [1], [0, 0, 1, 1], [], []>} : vector<16x128xbf16>, vector<128x128xbf16>, vector<16x128xf32> -> vector<16x128xf32>
    %177 = vector.shape_cast %176 : vector<16x128xf32> to vector<2x8x128xf32>
    %c0_55 = arith.constant 0 : index
    %c0_56 = arith.constant 0 : index
    %178 = vector.load %arg8[%c0_55, %c0_56] : memref<1x128xf32, #tpu.memory_space<vmem>>, vector<1x128xf32>
    %179 = vector.shape_cast %178 : vector<1x128xf32> to vector<1x1x128xf32>
    %180 = vector.broadcast %179 : vector<1x1x128xf32> to vector<2x8x128xf32>
    %181 = arith.addf %177, %180 : vector<2x8x128xf32>
    %c0_57 = arith.constant 0 : index
    %c0_58 = arith.constant 0 : index
    %182 = vector.load %arg9[%c0_57, %c0_58] : memref<1x128xf32, #tpu.memory_space<vmem>>, vector<1x128xf32>
    %183 = vector.shape_cast %182 : vector<1x128xf32> to vector<1x1x128xf32>
    %184 = vector.broadcast %183 : vector<1x1x128xf32> to vector<2x8x128xf32>
    %185 = arith.mulf %181, %184 : vector<2x8x128xf32>
    %cst_59 = arith.constant 1.000000e+00 : f32
    %186 = vector.broadcast %cst_59 : f32 to vector<1x1x128xf32>
    %187 = arith.subf %186, %183 : vector<1x1x128xf32>
    %188 = vector.broadcast %187 : vector<1x1x128xf32> to vector<2x8x128xf32>
    %189 = arith.mulf %4, %188 : vector<2x8x128xf32>
    %190 = arith.addf %185, %189 : vector<2x8x128xf32>
    %c0_60 = arith.constant 0 : index
    %c0_61 = arith.constant 0 : index
    %c0_62 = arith.constant 0 : index
    %191 = vector.load %arg10[%c0_60, %c0_61, %c0_62] : memref<2x8x128xf32, #tpu.memory_space<vmem>>, vector<2x8x128xf32>
    tpu.vector_store %arg10[%c0_60, %c0_61, %c0_62], %190 {strides = array<i32>} : memref<2x8x128xf32, #tpu.memory_space<vmem>>, vector<2x8x128xf32>,
    return
  }
  func.func @transform_0(%arg0: i32) -> (i32, i32, i32) {
    %c0_i32 = arith.constant 0 : i32
    %c0_i32_0 = arith.constant 0 : i32
    %c0_i32_1 = arith.constant 0 : i32
    return %c0_i32, %arg0, %c0_i32_0 : i32, i32, i32
  }
  func.func @transform_1(%arg0: i32) -> (i32, i32, i32) {
    %c0_i32 = arith.constant 0 : i32
    %c0_i32_0 = arith.constant 0 : i32
    %c0_i32_1 = arith.constant 0 : i32
    %c0_i32_2 = arith.constant 0 : i32
    return %c0_i32, %c0_i32_0, %c0_i32_1 : i32, i32, i32
  }
  func.func @transform_2(%arg0: i32) -> (i32, i32, i32) {
    %c0_i32 = arith.constant 0 : i32
    %c0_i32_0 = arith.constant 0 : i32
    %c0_i32_1 = arith.constant 0 : i32
    return %c0_i32, %arg0, %c0_i32_0 : i32, i32, i32
  }
  func.func @transform_3(%arg0: i32) -> (i32, i32, i32) {
    %c0_i32 = arith.constant 0 : i32
    %c0_i32_0 = arith.constant 0 : i32
    %c0_i32_1 = arith.constant 0 : i32
    return %c0_i32, %arg0, %c0_i32_0 : i32, i32, i32
  }
  func.func @transform_4(%arg0: i32) -> (i32, i32) {
    %c0_i32 = arith.constant 0 : i32
    %c0_i32_0 = arith.constant 0 : i32
    return %arg0, %c0_i32 : i32, i32
  }
  func.func @transform_5(%arg0: i32) -> (i32, i32) {
    %c0_i32 = arith.constant 0 : i32
    %c0_i32_0 = arith.constant 0 : i32
    %c0_i32_1 = arith.constant 0 : i32
    return %c0_i32, %c0_i32_0 : i32, i32
  }
  func.func @transform_6(%arg0: i32) -> (i32, i32) {
    %c0_i32 = arith.constant 0 : i32
    %c0_i32_0 = arith.constant 0 : i32
    %c0_i32_1 = arith.constant 0 : i32
    return %c0_i32, %c0_i32_0 : i32, i32
  }
  func.func @transform_7(%arg0: i32) -> (i32, i32) {
    %c0_i32 = arith.constant 0 : i32
    %c0_i32_0 = arith.constant 0 : i32
    %c0_i32_1 = arith.constant 0 : i32
    return %c0_i32, %c0_i32_0 : i32, i32
  }
  func.func @transform_8(%arg0: i32) -> (i32, i32) {
    %c0_i32 = arith.constant 0 : i32
    %c0_i32_0 = arith.constant 0 : i32
    %c0_i32_1 = arith.constant 0 : i32
    return %c0_i32, %c0_i32_0 : i32, i32
  }
  func.func @transform_9(%arg0: i32) -> (i32, i32, i32) {
    %c0_i32 = arith.constant 0 : i32
    %c0_i32_0 = arith.constant 0 : i32
    %c0_i32_1 = arith.constant 0 : i32
    return %c0_i32, %arg0, %c0_i32_0 : i32, i32, i32
  }
}

</mosaic_0001>

<bundles_post_ra>
// kernel: hgt_layer_inter_forward.2
= control target key start
LH: loop header
LB: loop body
LE: loop exit
PB: predicated region body
PF: predicated region fallthrough
CT: control target
= control target key end

     0   :  { %10 = vsyncpa [#allocation3], 0  ;;  %s785_s15 = smov 0   ;;  %s838_s0 = inlined_call_operand.vmem [shape: f32[16,128], index: 0, kind: input, shape index: {}]   ;;  %s839_s1 = inlined_call_operand.hbm [shape: bf16[128,384], index: 1, kind: input, shape index: {}]   ;;  %s840_s2 = inlined_call_operand.vmem [shape: f32[1,384], index: 2, kind: input, shape index: {}]   ;;  %s841_s3 = inlined_call_operand.vmem [shape: bf16[16,128], index: 3, kind: output, shape index: {0}]   ;;  %s842_s4 = inlined_call_operand.vmem [shape: bf16[16,256], index: 4, kind: output, shape index: {1}]  }
   0x1 LB: > { %s791_s16 = sadd.s32 4294967295, %s752_s15   ;;  %p593_p0 = scmp.ge.s32.totalorder %s752_s15, 1  ;;  %s752_s15 = sphi %s785_s15, %s16_s15  }
   0x2   : > { %p141_p1 = scmp.lt.s32.totalorder %s752_s15, 3  ;;  %s754_s17 = smov [#allocation2]  }
   0x3   : > { %s153_s18 = sshll.u32 %s754_s17, 4  ;;  %p668_p3 = scmp.eq.s32.totalorder %s791_s16, 0  ;;  %s154_s18 = int_to_ptr.vmem [resolvable:$true] %s153_s18 }
   0x4   : > { %p795_p2 = pnand %p593_p0, %p141_p1  ;;  %s727_s20 = scalar_lea.vmem %s154_s18, 3072 }
   0x5   : > { %p728_p7 = scmp.ne.s32.totalorder %s154_s18, %s727_s20  ;;  %p735_p10 = scmp.lt.s32.totalorder %s154_s18, %s154_s18 }
   0x6   : > { %p664_p4 = pneg %p795_p2  ;;  %p736_p11 = scmp.lt.s32.totalorder %s727_s20, %s727_s20 }
   0x8   : > { %p665_p5 = pnand %p668_p3, %p664_p4  ;;  %p737_p12 = por %p736_p11, %p735_p10 }
   0xa   : > { %p718_p6 = pneg %p665_p5 }
   0xc   : > { %p730_p8 = pnand %p728_p7, %p718_p6 }
   0xe   : > { %p731_p9 = pneg %p730_p8 }
  0x10   : > { %p738_p13 = pnand %p737_p12, %p731_p9 }
  0x12   : > { %741 = shalt.err (!%p738_p13)
}
  0x13   : > { %s755_s21 = smov 192   ;;  %s756_s22 = smov 12  }
  0x14   : > { %667 = dma.hbm_to_vmem [thread:$0]  (!%p665_p5), %s839_s1, 3072, %s154_s18, [#allocation3], %s755_s21, %s755_s21, %s756_s22  }
  0x15   : > { %179 = sbr.rel (%p795_p2) target bundleno = 261 (0x105), region = 32 }
  0x1a   : > { %747 = dma.done.wait (%p668_p3), [#allocation3], 3072  }
  0x1b   : > { %749 = vsyncadd (%p668_p3), [#allocation3], 4294964224  ;;  %v757_v0 = vmov 0.0   ;;  %vm758_vm0 = vmmov 0   ;;  %v759_v1 = vmov 0   ;;  %p208_p0 = scmp.lt.s32.totalorder %s791_s16, 1  ;;  %v258_v28 = vlaneseq }
  0x1c   : > { %640 = vmatprep.subr.bf16.mxu1 %v757_v0  ;;  %656 = vmatprep.mubr.msk.bf16.mxu1 %vm758_vm0, %v757_v0  ;;  %v684_v2 = vld [vmem:[#allocation2 + $0xac] ss:$12 sps:$4 sm:$0xff]   ;;  %v686_v3 = vld [vmem:[#allocation2 + $0xb0] ss:$12 sps:$4 sm:$0xff]   ;;  %v687_v4 = vld [vmem:[#allocation2 + $0xa8] ss:$12 sps:$4 sm:$0xff]  }
  0x1d   : > { %433 = vmatprep.mubr.bf16.mxu0 %v759_v1  ;;  %401 = vmatprep.subr.bf16.mxu0 %v684_v2  ;;  %v688_v5 = vld [vmem:[#allocation2 + $0x94] ss:$12 sps:$4 sm:$0xff]   ;;  %v690_v6 = vld [vmem:[#allocation2 + $0x98] ss:$12 sps:$4 sm:$0xff]   ;;  %v691_v7 = vld [vmem:[#allocation2 + $0x90] ss:$12 sps:$4 sm:$0xff]  }
  0x1e   : > { %641 = vmatpush3.bf16.msra.mxu1 %v686_v3  ;;  %402 = vmatpush1.bf16.msra.mxu0 %v687_v4  ;;  %v692_v8 = vld [vmem:[#allocation2 + $0x7c] ss:$12 sps:$4 sm:$0xff]   ;;  %v694_v9 = vld [vmem:[#allocation2 + $0x80] ss:$12 sps:$4 sm:$0xff]   ;;  %v695_v10 = vld [vmem:[#allocation2 + $0x78] ss:$12 sps:$4 sm:$0xff]  }
  0x1f   : > { %642 = vmatprep.subr.bf16.mxu1 %v757_v0  ;;  %403 = vmatprep.subr.bf16.mxu0 %v688_v5  ;;  %v696_v11 = vld [vmem:[#allocation2 + $0x64] ss:$12 sps:$4 sm:$0xff]   ;;  %v698_v12 = vld [vmem:[#allocation2 + $0x68] ss:$12 sps:$4 sm:$0xff]   ;;  %v699_v13 = vld [vmem:[#allocation2 + $0x60] ss:$12 sps:$4 sm:$0xff]  }
  0x20   : > { %v700_v14 = vld [vmem:[#allocation2 + $0x4c] ss:$12 sps:$4 sm:$0xff]   ;;  %v702_v15 = vld [vmem:[#allocation2 + $0x50] ss:$12 sps:$4 sm:$0xff]   ;;  %v703_v16 = vld [vmem:[#allocation2 + $0x48] ss:$12 sps:$4 sm:$0xff]  }
  0x21   : > { %s845_s16 = smov (!%p208_p0, %s791_s16), 1  ;;  %v704_v17 = vld [vmem:[#allocation2 + $0x34] ss:$12 sps:$4 sm:$0xff]   ;;  %v706_v18 = vld [vmem:[#allocation2 + $0x38] ss:$12 sps:$4 sm:$0xff]   ;;  %v259_v29 = vshrl.u32 %v258_v28, 7 }
  0x22   : > { %643 = vmatpush3.bf16.msra.mxu1 %v690_v6  ;;  %404 = vmatpush1.bf16.msra.mxu0 %v691_v7  ;;  %v707_v19 = vld [vmem:[#allocation2 + $0x30] ss:$12 sps:$4 sm:$0xff]   ;;  %s598_s25 = sshll.u32 %s845_s16, 3  ;;  %v710_v21 = vld [vmem:[#allocation2 + $0x20] ss:$12 sps:$4 sm:$0xff]   ;;  %s599_s5 = sshll.u32 %s845_s16, 2 }
  0x23   : > { %644 = vmatprep.subr.bf16.mxu1 %v757_v0  ;;  %405 = vmatprep.subr.bf16.mxu0 %v692_v8  ;;  %v708_v20 = vld [vmem:[#allocation2 + $0x1c] ss:$12 sps:$4 sm:$0xff]   ;;  %v711_v22 = vld [vmem:[#allocation2 + $0x18] ss:$12 sps:$4 sm:$0xff]   ;;  %s211_s28 = scalar_lea.vmem %s838_s0, %s598_s25  ;;  %v715_v26 = vld [vmem:[#allocation2] ss:$12 sps:$4 sm:$0xff]   ;;  %s215_s8 = scalar_lea.vmem %s841_s3, %s599_s5 }
  0x24   : > { %v712_v23 = vld [vmem:[#allocation2 + $0x4] ss:$12 sps:$4 sm:$0xff]   ;;  %v714_v24 = vld [vmem:[#allocation2 + $0x8] ss:$12 sps:$4 sm:$0xff]   ;;  %v268_v30 = vsub.s32 2, %v259_v29  ;;  %v260_v31 = vsub.s32 0, %v259_v29  ;;  %s220_s11 = scalar_lea.vmem %s842_s4, %s598_s25 }
  0x25   : > { %v222_v25 = vld [vmem:[%s211_s28] sm:$0xff]  ;;  %v264_v33 = vsub.s32 1, %v259_v29 }
  0x26   : > { %645 = vmatpush3.bf16.msra.mxu1 %v694_v9  ;;  %406 = vmatpush1.bf16.msra.mxu0 %v695_v10  ;;  %v223_v27 = vpack.c.bf16 %v222_v25, %v222_v25  ;;  %v256_v32 = vld [vmem:[%s840_s2] sm:$0x7] }
  0x27   : > { %646 = vmatprep.subr.bf16.mxu1 %v757_v0  ;;  %407 = vmatprep.subr.bf16.mxu0 %v696_v11  ;;  %v269_v34 = vrot.slane %v256_v32, %v268_v30  ;;  %v261_v35 = vrot.slane %v256_v32, %v260_v31  ;;  %v265_v37 = vrot.slane %v256_v32, %v264_v33 }
  0x2a   : > { %647 = vmatpush3.bf16.msra.mxu1 %v698_v12  ;;  %408 = vmatpush1.bf16.msra.mxu0 %v699_v13 }
  0x2b   : > { %648 = vmatprep.subr.bf16.mxu1 %v757_v0  ;;  %409 = vmatprep.subr.bf16.mxu0 %v700_v14 }
  0x2e   : > { %649 = vmatpush3.bf16.msra.mxu1 %v702_v15  ;;  %410 = vmatpush1.bf16.msra.mxu0 %v703_v16 }
  0x2f   : > { %650 = vmatprep.subr.bf16.mxu1 %v757_v0  ;;  %411 = vmatprep.subr.bf16.mxu0 %v704_v17 }
  0x32   : > { %651 = vmatpush3.bf16.msra.mxu1 %v706_v18  ;;  %412 = vmatpush1.bf16.msra.mxu0 %v707_v19 }
  0x33   : > { %652 = vmatprep.subr.bf16.mxu1 %v757_v0  ;;  %413 = vmatprep.subr.bf16.mxu0 %v708_v20 }
  0x36   : > { %653 = vmatpush3.bf16.msra.mxu1 %v710_v21  ;;  %414 = vmatpush1.bf16.msra.mxu0 %v711_v22 }
  0x37   : > { %654 = vmatprep.subr.bf16.mxu1 %v757_v0  ;;  %415 = vmatprep.subr.bf16.mxu0 %v712_v23 }
  0x3a   : > { %655 = vmatpush3.bf16.msra.mxu1 %v714_v24  ;;  %416 = vmatpush1.bf16.msra.mxu0 %v715_v26 }
  0x3d   : > { %657 = vmatmul.mubr.bf16.vlgmr.msra.gmra.mxu1 %v223_v27  ;;  %434 = vmatmul.mubr.bf16.vlgmr.msra.gmra.mxu0 %v223_v27 }
  0xfd   : > { %v476_v36 = vpop.f32.mrf.mxu1  ;;  %v435_v38 = vpop.f32.mrf.mxu0 }
  0xfe   : > { %v477_v39 = vadd.f32 %v476_v36, %v269_v34  ;;  %v436_v40 = vadd.f32 %v435_v38, %v261_v35 }
  0xff   : > { %v658_v41 = vpop.f32.mrf.mxu1  ;;  %v437_v42 = vpop.f32.mrf.mxu0 }
 0x100   : > { %v482_v43 = vpack.c.bf16 %v436_v40, %v436_v40  ;;  %v438_v44 = vadd.f32 %v437_v42, %v265_v37 }
 0x101   : > { %v479_v45 = vpop.f32.mrf.mxu1  ;;  %v439_v46 = vpop.f32.mrf.mxu0 }
 0x102   : > { %483 = vst [vmem:[%s215_s8] sm:$0xf] %v482_v43  ;;  %v630_v47 = vpack.c.bf16 %v477_v39, %v438_v44 }
 0x103   : > { %v659_v48 = vpop.f32.mrf.mxu1  ;;  %v440_v49 = vpop.f32.mrf.mxu0 }
 0x104   : > { %492 = vst [vmem:[%s220_s11] sm:$0xff] %v630_v47 }
 0x105 PF: > { %s16_s15 = sadd.s32 1, %s752_s15  }
 0x106   : > { %p13_p1 = scmp.ge.s32.totalorder %s16_s15, 4  }
 0x108   :  { %15 = sbr.rel (!%p13_p1) target bundleno = 1 (0x1), region = 79 }
 0x10d   :  { %528 = vsyncpa [#allocation3], 1 }
 0x10e   :  { %530 = vsyncpa [#allocation3 + $0x1], 1 }

// kernel: hgt_layer_inter_forward.3
= control target key start
LH: loop header
LB: loop body
LE: loop exit
PB: predicated region body
PF: predicated region fallthrough
CT: control target
= control target key end

     0   :  { %v46_v0 = vlaneseq  ;;  %v1327_v1 = vmov 0.0   ;;  %vm1328_vm0 = vmmov 0   ;;  %vm142_vm2 = vcmask 64512   ;;  %s1672_s1 = inlined_call_operand.vmem [shape: bf16[2,8,256], index: 1, kind: input, shape index: {}]   ;;  %s1673_s0 = inlined_call_operand.vmem [shape: bf16[2,8,128], index: 0, kind: input, shape index: {}]   ;;  %s1674_s5 = inlined_call_operand.vmem [shape: f32[8,128], index: 5, kind: input, shape index: {}]   ;;  %s1675_s3 = inlined_call_operand.vmem [shape: s8[4,8,8], index: 3, kind: input, shape index: {}]   ;;  %s1676_s4 = inlined_call_operand.vmem [shape: f32[8,8], index: 4, kind: input, shape index: {}]   ;;  %s1677_s6 = inlined_call_operand.vmem [shape: bf16[128,128], index: 6, kind: input, shape index: {}]   ;;  %s1678_s8 = inlined_call_operand.vmem [shape: f32[1,128], index: 8, kind: input, shape index: {}]   ;;  %s1679_s2 = inlined_call_operand.vmem [shape: f32[2,8,128], index: 2, kind: input, shape index: {}]   ;;  %s1680_s7 = inlined_call_operand.vmem [shape: f32[1,128], index: 7, kind: input, shape index: {}]   ;;  %s1681_s9 = inlined_call_operand.vmem [shape: f32[2,8,128], index: 9, kind: output, shape index: {}]  }
   0x1   :  { %1158 = vmatprep.subr.bf16.mxu1 %v1327_v1  ;;  %v1388_v2 = vld [vmem:[%s1672_s1] sm:$0xf]  ;;  %1160 = vmatprep.mubr.msk.bf16.mxu1 %vm1328_vm0, %v1327_v1  ;;  %v1433_v16 = vld [vmem:[%s1672_s1 + $0x8] sm:$0xf]  ;;  %v39_v58 = vld [vmem:[%s1672_s1 + $0x4] sm:$0xf] }
   0x2   :  { %v1114_v3 = vld [vmem:[%s1673_s0] sm:$0xff]   ;;  %1159 = vmatpush3.bf16.xpose.msra.mxu1 %v1388_v2  ;;  %v1404_v6 = vshrl.u32 %v46_v0, 7  ;;  %1182 = vmatprep.subr.bf16.mxu0 %v1327_v1  ;;  %vm170_vm4 = vcmask 1043456   ;;  %v40_v0 = vld [vmem:[%s1672_s1 + $0xc] sm:$0xf] }
   0x3   :  { %v1398_v4 = vld [vmem:[%s1674_s5] sm:$0xff]  ;;  %1164 = vmatprep.subr.bf16.mxu1 %v1327_v1  ;;  %1183 = vmatpush3.bf16.xpose.msra.mxu0 %v1388_v2  ;;  %v1409_v7 = vunpack.c.l.bf16 %v1114_v3  ;;  %v1425_v12 = vunpack.c.h.bf16 %v1114_v3  ;;  %v1468_v59 = vsel %vm170_vm4, %v39_v58, 0 }
   0x4   :  { %v1402_v5 = vmul.f32 0.17677669, %v1398_v4  ;;  %v1412_v8 = vsub.s32 0, %v1404_v6  ;;  %1184 = vmatprep.mubr.msk.bf16.mxu0 %vm1328_vm0, %v1327_v1  ;;  %v276_v9 = vsub.s32 1, %v1404_v6  ;;  %1194 = vmatprep.subr.bf16.mxu0 %v1327_v1  ;;  %v1447_v20 = vld [vmem:[%s1675_s3] sm:$0xff]  }
   0x5   :  { %v135_v21 = vunpack.c.0.s8 %v1447_v20  ;;  %v364_v23 = vunpack.c.1.s8 %v1447_v20 }
   0x6   :  { %v49_v10 = vrot.slane %v1402_v5, %v1412_v8  ;;  %v1423_v11 = vrot.slane %v1402_v5, %v276_v9 }
   0x7   :  { %v136_v22 = vcvt.s32.f32 %v135_v21  ;;  %v1453_v29 = vcvt.s32.f32 %v364_v23 }
   0x8   :  { %v50_v13 = vmul.f32 %v1409_v7, %v49_v10  ;;  %v278_v14 = vmul.f32 %v1409_v7, %v1423_v11  ;;  %v51_v18 = vmul.f32 %v1425_v12, %v49_v10 }
   0x9   :  { %vm137_vm1 = vcmp.gt.f32.partialorder %v136_v22, 0.0  ;;  %vm366_vm3 = vcmp.gt.f32.partialorder %v1453_v29, 0.0  ;;  %v279_v22 = vmul.f32 %v1425_v12, %v1423_v11 }
   0xa   :  { %v52_v15 = vpack.c.bf16 %v50_v13, %v50_v13  ;;  %v280_v17 = vpack.c.bf16 %v278_v14, %v278_v14  ;;  %v53_v19 = vpack.c.bf16 %v51_v18, %v51_v18  ;;  %v1478_v13 = vsel %vm170_vm4, %v40_v0, 0 }
   0xc   :  { %1161 = vmatmul.mubr.bf16.vlgmr.msra.gmra.mxu1 %v52_v15  ;;  %1185 = vmatmul.mubr.bf16.vlgmr.msra.gmra.mxu0 %v280_v17  ;;  %v496_v17 = vsub.s32 2, %v1404_v6 }
   0xd   :  { %1165 = vmatpush3.bf16.xpose.msra.mxu1 %v1433_v16  ;;  %1166 = vmatprep.mubr.msk.bf16.mxu1 %vm1328_vm0, %v1327_v1 }
   0xe   :  { %1170 = vmatprep.subr.bf16.mxu1 %v1327_v1  ;;  %1196 = vmatprep.mubr.msk.bf16.mxu0 %vm1328_vm0, %v1327_v1  ;;  %v1492_v23 = vrot.slane %v1402_v5, %v496_v17 }
   0xf   :  { %1195 = vmatpush3.bf16.msra.mxu0 %v1468_v59 }
  0x10   :  { %1206 = vmatprep.subr.bf16.mxu0 %v1327_v1 }
  0x14   :  { %1167 = vmatmul.mubr.bf16.vlgmr.msra.gmra.mxu1 %v53_v19 }
  0x15   :  { %1172 = vmatprep.mubr.msk.bf16.mxu1 %vm1328_vm0, %v1327_v1  ;;  %1171 = vmatpush3.bf16.msra.mxu1 %v1468_v59 }
  0x16   :  { %1176 = vmatprep.subr.bf16.mxu1 %v1327_v1 }
  0xcc   :  { %v88_v24 = vpop.f32.mrf.mxu1  ;;  %v316_v25 = vpop.f32.mrf.mxu0 }
  0xcd   :  { %v140_v26 = vsel %vm137_vm1, %v88_v24, -1e+30  ;;  %v369_v37 = vsel %vm366_vm3, %v316_v25, -1e+30  ;;  %v281_v25 = vpack.c.bf16 %v279_v22, %v279_v22  ;;  %v499_v22 = vmul.f32 %v1425_v12, %v1492_v23 }
  0xce   :  { %v1162_v27 = vpop.f32.mrf.mxu1  ;;  %v143_v28 = vsel %vm142_vm2, %v140_v26, -inf  ;;  %v1186_v30 = vpop.f32.mrf.mxu0  ;;  %v371_v41 = vsel %vm142_vm2, %v369_v37, -inf }
  0xcf   :  { %144 = vmax.xlane.f32.xlu0 %v143_v28 }
  0xd0   :  { %v91_v31 = vpop.f32.mrf.mxu1  ;;  %v319_v32 = vpop.f32.mrf.mxu0 }
  0xd2   :  { %v1163_v33 = vpop.f32.mrf.mxu1  ;;  %v1187_v34 = vpop.f32.mrf.mxu0 }
  0xd3   :  { %v584_v33 = vunpack.c.2.s8 %v1447_v20 }
  0xd4   :  { %v128_v35 = vpop.f32.mrf.mxu1 }
  0xd5   :  { %v141_v36 = vsel %vm137_vm1, %v128_v35, -1e+30 }
  0xd6   :  { %v1168_v38 = vpop.f32.mrf.mxu1  ;;  %v146_v39 = vsel %vm142_vm2, %v141_v36, -inf }
  0xd7   :  { %147 = vmax.xlane.f32.xlu0 %v146_v39  ;;  %v1520_v38 = vcvt.s32.f32 %v584_v33 }
  0xd8   :  { %v131_v40 = vpop.f32.mrf.mxu1 }
  0xd9   :  { %vm586_vm5 = vcmp.gt.f32.partialorder %v1520_v38, 0.0 }
  0xda   :  { %v1169_v42 = vpop.f32.mrf.mxu1 }
  0xdb   :  { %372 = vmax.xlane.f32.xlu0 %v371_v41 }
 0x158   :  { %v145_v43 = vpop.xlane.xlu0 %144 }
 0x159   :  { %v149_v44 = vsub.f32 %v140_v26, %v145_v43  ;;  %v498_v26 = vmul.f32 %v1409_v7, %v1492_v23 }
 0x15b   :  { %v151_v45 = vmul.f32 1.442695, %v149_v44  ;;  %v500_v5 = vpack.c.bf16 %v498_v26, %v498_v26  ;;  %v501_v26 = vpack.c.bf16 %v499_v22, %v499_v22 }
 0x15d   :  { %1295 = vpow2.f32 %v151_v45 }
 0x160   :  { %v148_v46 = vpop.xlane.xlu0 %147 }
 0x161   :  { %v150_v47 = vsub.f32 %v141_v36, %v148_v46 }
 0x163   :  { %v153_v48 = vmul.f32 1.442695, %v150_v47 }
 0x164   :  { %v373_v49 = vpop.xlane.xlu0 %372 }
 0x165   :  { %1297 = vpow2.f32 %v153_v48  ;;  %v377_v50 = vsub.f32 %v369_v37, %v373_v49 }
 0x167   :  { %v379_v51 = vmul.f32 1.442695, %v377_v50 }
 0x169   :  { %1299 = vpow2.f32 %v379_v51 }
 0x16a   :  { %v1296_v52 = vpop.eup %1295 }
 0x16b   :  { %v155_v53 = vsel %vm142_vm2, %v1296_v52, 0.0 }
 0x16c   :  { %156 = vadd.xlane.f32.xlu1 %v155_v53 }
 0x172   :  { %v1298_v54 = vpop.eup %1297 }
 0x173   :  { %v158_v55 = vsel %vm142_vm2, %v1298_v54, 0.0 }
 0x174   :  { %159 = vadd.xlane.f32.xlu1 %v158_v55 }
 0x176   :  { %v1300_v56 = vpop.eup %1299 }
 0x177   :  { %v383_v57 = vsel %vm142_vm2, %v1300_v56, 0.0 }
 0x178   :  { %384 = vadd.xlane.f32.xlu0 %v383_v57 }
 0x1f5   :  { %v157_v60 = vpop.xlane.xlu1 %156 }
 0x1f6   :  { %1301 = vrcp.f32 %v157_v60 }
 0x1fd   :  { %v160_v61 = vpop.xlane.xlu1 %159 }
 0x1fe   :  { %1303 = vrcp.f32 %v160_v61 }
 0x201   :  { %v385_v62 = vpop.xlane.xlu0 %384 }
 0x202   :  { %1305 = vrcp.f32 %v385_v62 }
 0x203   :  { %v1302_v63 = vpop.eup %1301 }
 0x204   :  { %v163_v3 = vmul.f32 %v1302_v63, %v1296_v52 }
 0x206   :  { %v165_v10 = vpack.c.bf16 %v163_v3, %v163_v3 }
 0x208   :  { %1173 = vmatmul.mubr.msk.bf16.vlgmr.msra.gmra.mxu1 %vm142_vm2, %v165_v10 }
 0x209   :  { %1177 = vmatpush3.bf16.msra.mxu1 %v1478_v13  ;;  %1178 = vmatprep.mubr.msk.bf16.mxu1 %vm1328_vm0, %v1327_v1 }
 0x20a   :  { %1188 = vmatprep.subr.bf16.mxu1 %v1327_v1 }
 0x20b   :  { %v1304_v14 = vpop.eup %1303 }
 0x20c   :  { %v164_v15 = vmul.f32 %v1304_v14, %v1298_v54  ;;  %v714_v14 = vmul.f32 0.125, %v1398_v4 }
 0x20e   :  { %v166_v18 = vpack.c.bf16 %v164_v15, %v164_v15  ;;  %v717_v15 = vsub.s32 3, %v1404_v6 }
 0x20f   :  { %v1306_v19 = vpop.eup %1305 }
 0x210   :  { %1179 = vmatmul.mubr.msk.bf16.vlgmr.msra.gmra.mxu1 %vm142_vm2, %v166_v18  ;;  %v391_v21 = vmul.f32 %v1306_v19, %v1300_v56 }
 0x211   :  { %1189 = vmatpush3.bf16.xpose.msra.mxu1 %v1433_v16  ;;  %1190 = vmatprep.mubr.msk.bf16.mxu1 %vm1328_vm0, %v1327_v1 }
 0x212   :  { %v393_v24 = vpack.c.bf16 %v391_v21, %v391_v21  ;;  %1200 = vmatprep.subr.bf16.mxu1 %v1327_v1 }
 0x214   :  { %1197 = vmatmul.mubr.msk.bf16.vlgmr.msra.gmra.mxu0 %vm142_vm2, %v393_v24  ;;  %v1538_v24 = vrot.slane %v714_v14, %v717_v15 }
 0x215   :  { %1207 = vmatpush3.bf16.xpose.msra.mxu0 %v1388_v2  ;;  %1208 = vmatprep.mubr.msk.bf16.mxu0 %vm1328_vm0, %v1327_v1 }
 0x216   :  { %1218 = vmatprep.subr.bf16.mxu0 %v1327_v1 }
 0x218   :  { %1191 = vmatmul.mubr.bf16.vlgmr.msra.gmra.mxu1 %v281_v25 }
 0x219   :  { %1201 = vmatpush3.bf16.msra.mxu1 %v1478_v13  ;;  %1202 = vmatprep.mubr.msk.bf16.mxu1 %vm1328_vm0, %v1327_v1 }
 0x21a   :  { %1212 = vmatprep.subr.bf16.mxu1 %v1327_v1 }
 0x21c   :  { %1209 = vmatmul.mubr.bf16.vlgmr.msra.gmra.mxu0 %v500_v5  ;;  %v719_v5 = vmul.f32 %v1409_v7, %v1538_v24 }
 0x21d   :  { %1219 = vmatpush3.bf16.msra.mxu0 %v1468_v59  ;;  %1220 = vmatprep.mubr.msk.bf16.mxu0 %vm1328_vm0, %v1327_v1 }
 0x21e   :  { %1230 = vmatprep.subr.bf16.mxu0 %v1327_v1  ;;  %v721_v23 = vpack.c.bf16 %v719_v5, %v719_v5 }
 0x2c8   :  { %v1513_v11 = vpop.f32.mrf.mxu1 }
 0x2ca   :  { %v1174_v27 = vpop.f32.mrf.mxu1 }
 0x2cb   :  { %v805_v27 = vunpack.c.3.s8 %v1447_v20 }
 0x2cc   :  { %v211_v28 = vpop.f32.mrf.mxu1 }
 0x2ce   :  { %v1175_v30 = vpop.f32.mrf.mxu1 }
 0x2d0   :  { %v1515_v31 = vpop.f32.mrf.mxu1 }
 0x2d2   :  { %v1180_v32 = vpop.f32.mrf.mxu1 }
 0x2d4   :  { %v257_v34 = vpop.f32.mrf.mxu1  ;;  %v1518_v35 = vpop.f32.mrf.mxu0 }
 0x2d5   :  { %v1564_v34 = vcvt.s32.f32 %v805_v27  ;;  %v1331_v27 = vmov 4  }
 0x2d6   :  { %v1181_v36 = vpop.f32.mrf.mxu1  ;;  %v1198_v37 = vpop.f32.mrf.mxu0 }
 0x2d7   :  { %vm807_vm6 = vcmp.gt.f32.partialorder %v1564_v34, 0.0 }
 0x2d8   :  { %v356_v39 = vpop.f32.mrf.mxu1  ;;  %v435_v40 = vpop.f32.mrf.mxu0 }
 0x2d9   :  { %v370_v41 = vsel %vm366_vm3, %v356_v39, -1e+30 }
 0x2da   :  { %v1192_v42 = vpop.f32.mrf.mxu1  ;;  %v1199_v43 = vpop.f32.mrf.mxu0  ;;  %v374_v44 = vsel %vm142_vm2, %v370_v41, -inf }
 0x2db   :  { %375 = vmax.xlane.f32.xlu1 %v374_v44 }
 0x2dc   :  { %v359_v45 = vpop.f32.mrf.mxu1  ;;  %v536_v46 = vpop.f32.mrf.mxu0 }
 0x2dd   :  { %v589_v47 = vsel %vm586_vm5, %v536_v46, -1e+30 }
 0x2de   :  { %v1193_v48 = vpop.f32.mrf.mxu1  ;;  %v591_v49 = vsel %vm142_vm2, %v589_v47, -inf  ;;  %v1210_v50 = vpop.f32.mrf.mxu0 }
 0x2df   :  { %592 = vmax.xlane.f32.xlu0 %v591_v49  ;;  %v1329_v48 = vmov 0  }
 0x2e0   :  { %v539_v51 = vpop.f32.mrf.mxu0  ;;  %1281 = vset.pattern.permute.xlu0 %v1329_v48 }
 0x2e2   :  { %v1211_v29 = vpop.f32.mrf.mxu0 }
 0x364   :  { %v376_v52 = vpop.xlane.xlu1 %375 }
 0x365   :  { %v378_v53 = vsub.f32 %v370_v41, %v376_v52 }
 0x367   :  { %v381_v54 = vmul.f32 1.442695, %v378_v53 }
 0x368   :  { %v593_v55 = vpop.xlane.xlu0 %592 }
 0x369   :  { %1307 = vpow2.f32 %v381_v54  ;;  %v597_v56 = vsub.f32 %v589_v47, %v593_v55 }
 0x36b   :  { %v599_v57 = vmul.f32 1.442695, %v597_v56 }
 0x36d   :  { %1309 = vpow2.f32 %v599_v57 }
 0x376   :  { %v1308_v58 = vpop.eup %1307 }
 0x377   :  { %v386_v60 = vsel %vm142_vm2, %v1308_v58, 0.0 }
 0x378   :  { %387 = vadd.xlane.f32.xlu1 %v386_v60 }
 0x37a   :  { %v1310_v61 = vpop.eup %1309 }
 0x37b   :  { %v603_v62 = vsel %vm142_vm2, %v1310_v61, 0.0 }
 0x37c   :  { %604 = vadd.xlane.f32.xlu0 %v603_v62 }
 0x401   :  { %v388_v63 = vpop.xlane.xlu1 %387 }
 0x402   :  { %1311 = vrcp.f32 %v388_v63 }
 0x405   :  { %v605_v0 = vpop.xlane.xlu0 %604 }
 0x406   :  { %1313 = vrcp.f32 %v605_v0  ;;  %v720_v0 = vmul.f32 %v1425_v12, %v1538_v24 }
 0x40f   :  { %v1312_v3 = vpop.eup %1311 }
 0x410   :  { %v392_v10 = vmul.f32 %v1312_v3, %v1308_v58  ;;  %v43_v58 = vld [vmem:[%s1676_s4] sm:$0xff]  ;;  %v722_v3 = vpack.c.bf16 %v720_v0, %v720_v0  ;;  %v944_v0 = vsub.f32 1.0, %v1398_v4 }
 0x412   :  { %v394_v18 = vpack.c.bf16 %v392_v10, %v392_v10 }
 0x413   :  { %v1314_v19 = vpop.eup %1313 }
 0x414   :  { %1203 = vmatmul.mubr.msk.bf16.vlgmr.msra.gmra.mxu1 %vm142_vm2, %v394_v18  ;;  %v611_v21 = vmul.f32 %v1314_v19, %v1310_v61 }
 0x415   :  { %1213 = vmatpush3.bf16.xpose.msra.mxu1 %v1433_v16  ;;  %1214 = vmatprep.mubr.msk.bf16.mxu1 %vm1328_vm0, %v1327_v1 }
 0x416   :  { %v613_v25 = vpack.c.bf16 %v611_v21, %v611_v21  ;;  %1224 = vmatprep.subr.bf16.mxu1 %v1327_v1 }
 0x418   :  { %1221 = vmatmul.mubr.msk.bf16.vlgmr.msra.gmra.mxu0 %vm142_vm2, %v613_v25 }
 0x419   :  { %1231 = vmatpush3.bf16.xpose.msra.mxu0 %v1388_v2  ;;  %1232 = vmatprep.mubr.msk.bf16.mxu0 %vm1328_vm0, %v1327_v1 }
 0x41a   :  { %1242 = vmatprep.subr.bf16.mxu0 %v1327_v1 }
 0x41c   :  { %1215 = vmatmul.mubr.bf16.vlgmr.msra.gmra.mxu1 %v501_v26 }
 0x41d   :  { %1225 = vmatpush3.bf16.msra.mxu1 %v1478_v13  ;;  %1226 = vmatprep.mubr.msk.bf16.mxu1 %vm1328_vm0, %v1327_v1 }
 0x41e   :  { %1236 = vmatprep.subr.bf16.mxu1 %v1327_v1 }
 0x420   :  { %1233 = vmatmul.mubr.bf16.vlgmr.msra.gmra.mxu0 %v721_v23 }
 0x421   :  { %1243 = vmatpush3.bf16.msra.mxu0 %v1468_v59  ;;  %1244 = vmatprep.mubr.msk.bf16.mxu0 %vm1328_vm0, %v1327_v1 }
 0x422   :  { %1254 = vmatprep.subr.bf16.mxu0 %v1327_v1 }
 0x4d4   :  { %v1559_v2 = vpop.f32.mrf.mxu1 }
 0x4d6   :  { %v1204_v7 = vpop.f32.mrf.mxu1 }
 0x4d7   :  { %v1330_v7 = vmov 1  }
 0x4d8   :  { %v478_v28 = vpop.f32.mrf.mxu1  ;;  %v1562_v30 = vpop.f32.mrf.mxu0  ;;  %1282 = vset.pattern.permute.xlu1 %v1330_v7 }
 0x4da   :  { %v1205_v32 = vpop.f32.mrf.mxu1  ;;  %v1222_v33 = vpop.f32.mrf.mxu0 }
 0x4dc   :  { %v576_v36 = vpop.f32.mrf.mxu1  ;;  %v655_v37 = vpop.f32.mrf.mxu0 }
 0x4dd   :  { %v590_v59 = vsel %vm586_vm5, %v576_v36, -1e+30 }
 0x4de   :  { %v1216_v39 = vpop.f32.mrf.mxu1  ;;  %v1223_v40 = vpop.f32.mrf.mxu0  ;;  %v594_v41 = vsel %vm142_vm2, %v590_v59, -inf }
 0x4df   :  { %595 = vmax.xlane.f32.xlu1 %v594_v41  ;;  %v1332_v41 = vmov 2  }
 0x4e0   :  { %v579_v20 = vpop.f32.mrf.mxu1  ;;  %v757_v42 = vpop.f32.mrf.mxu0 }
 0x4e1   :  { %v810_v43 = vsel %vm807_vm6, %v757_v42, -1e+30  ;;  %v1333_v20 = vmov 3   ;;  %v1287_v42 = vld [vmem:[%s1677_s6 + $0x38] sm:$0xff]  }
 0x4e2   :  { %v1217_v44 = vpop.f32.mrf.mxu1  ;;  %v812_v45 = vsel %vm142_vm2, %v810_v43, -inf  ;;  %v1234_v46 = vpop.f32.mrf.mxu0 }
 0x4e3   :  { %813 = vmax.xlane.f32.xlu0 %v812_v45  ;;  %v1289_v44 = vld [vmem:[%s1677_s6 + $0x28] sm:$0xff]   ;;  %v1290_v45 = vld [vmem:[%s1677_s6 + $0x20] sm:$0xff]   ;;  %v1291_v46 = vld [vmem:[%s1677_s6 + $0x18] sm:$0xff]  }
 0x4e4   :  { %v760_v47 = vpop.f32.mrf.mxu0 }
 0x4e5   :  { %v1292_v47 = vld [vmem:[%s1677_s6 + $0x10] sm:$0xff]  }
 0x4e6   :  { %v1235_v38 = vpop.f32.mrf.mxu0 }
 0x568   :  { %v596_v49 = vpop.xlane.xlu1 %595 }
 0x569   :  { %v598_v50 = vsub.f32 %v590_v59, %v596_v49 }
 0x56b   :  { %v601_v51 = vmul.f32 1.442695, %v598_v50 }
 0x56c   :  { %v814_v29 = vpop.xlane.xlu0 %813 }
 0x56d   :  { %1315 = vpow2.f32 %v601_v51  ;;  %v818_v52 = vsub.f32 %v810_v43, %v814_v29  ;;  %v1288_v43 = vld [vmem:[%s1677_s6 + $0x30] sm:$0xff]   ;;  %v1293_v51 = vld [vmem:[%s1677_s6 + $0x8] sm:$0xff]   ;;  %v1294_v29 = vld [vmem:[%s1677_s6] sm:$0xff]  }
 0x56f   :  { %v820_v53 = vmul.f32 1.442695, %v818_v52 }
 0x571   :  { %1317 = vpow2.f32 %v820_v53 }
 0x57a   :  { %v1316_v54 = vpop.eup %1315 }
 0x57b   :  { %v606_v55 = vsel %vm142_vm2, %v1316_v54, 0.0 }
 0x57c   :  { %607 = vadd.xlane.f32.xlu1 %v606_v55  ;;  %v263_v55 = vrot.slane %v1398_v4, %v1412_v8 }
 0x57e   :  { %v1318_v56 = vpop.eup %1317 }
 0x57f   :  { %v824_v57 = vsel %vm142_vm2, %v1318_v56, 0.0 }
 0x580   :  { %825 = vadd.xlane.f32.xlu0 %v824_v57 }
 0x596   :  { %266 = vperm.xlu0 %1281, %v43_v58  }
 0x59a   :  { %1286 = vset.pattern.permute.xlu0 %v1331_v27 }
 0x605   :  { %v608_v60 = vpop.xlane.xlu1 %607 }
 0x606   :  { %1319 = vrcp.f32 %v608_v60 }
 0x609   :  { %v826_v10 = vpop.xlane.xlu0 %825 }
 0x60a   :  { %1321 = vrcp.f32 %v826_v10 }
 0x611   :  { %v267_v57 = vpop.permute.xlu0 %266 }
 0x613   :  { %v1320_v61 = vpop.eup %1319 }
 0x614   :  { %v612_v62 = vmul.f32 %v1320_v61, %v1316_v54  ;;  %v484_v54 = vrot.slane %v1398_v4, %v276_v9  ;;  %v925_v61 = vrot.slane %v1398_v4, %v717_v15 }
 0x616   :  { %v614_v63 = vpack.c.bf16 %v612_v62, %v612_v62  ;;  %v269_v62 = vmul.f32 %v267_v57, %v263_v55 }
 0x617   :  { %v1322_v14 = vpop.eup %1321 }
 0x618   :  { %1227 = vmatmul.mubr.msk.bf16.vlgmr.msra.gmra.mxu1 %vm142_vm2, %v614_v63  ;;  %v832_v18 = vmul.f32 %v1322_v14, %v1318_v56 }
 0x619   :  { %1237 = vmatpush3.bf16.xpose.msra.mxu1 %v1433_v16  ;;  %1238 = vmatprep.mubr.msk.bf16.mxu1 %vm1328_vm0, %v1327_v1 }
 0x61a   :  { %1248 = vmatprep.subr.bf16.mxu1 %v1327_v1  ;;  %v834_v19 = vpack.c.bf16 %v832_v18, %v832_v18 }
 0x61c   :  { %1245 = vmatmul.mubr.msk.bf16.vlgmr.msra.gmra.mxu0 %vm142_vm2, %v834_v19  ;;  %v271_v19 = vmul.f32 %v269_v62, %v1515_v31 }
 0x61d   :  { %1270 = vmatprep.mubr.msk.bf16.mxu0 %vm1328_vm0, %v1327_v1  ;;  %1255 = vmatpush3.bf16.msra.mxu0 %v1287_v42 }
 0x61e   :  { %1256 = vmatprep.subr.bf16.mxu0 %v1327_v1 }
 0x620   :  { %1239 = vmatmul.mubr.bf16.vlgmr.msra.gmra.mxu1 %v722_v3 }
 0x621   :  { %1249 = vmatpush3.bf16.msra.mxu1 %v1478_v13  ;;  %1250 = vmatprep.mubr.msk.bf16.mxu1 %vm1328_vm0, %v1327_v1 }
 0x622   :  { %1257 = vmatpush3.bf16.msra.mxu0 %v1288_v43 }
 0x623   :  { %1258 = vmatprep.subr.bf16.mxu0 %v1327_v1 }
 0x626   :  { %1259 = vmatpush3.bf16.msra.mxu0 %v1289_v44 }
 0x627   :  { %1260 = vmatprep.subr.bf16.mxu0 %v1327_v1 }
 0x62a   :  { %1261 = vmatpush3.bf16.msra.mxu0 %v1290_v45 }
 0x62b   :  { %1262 = vmatprep.subr.bf16.mxu0 %v1327_v1 }
 0x62e   :  { %1263 = vmatpush3.bf16.msra.mxu0 %v1291_v46 }
 0x62f   :  { %1264 = vmatprep.subr.bf16.mxu0 %v1327_v1 }
 0x632   :  { %1265 = vmatpush3.bf16.msra.mxu0 %v1292_v47 }
 0x633   :  { %1266 = vmatprep.subr.bf16.mxu0 %v1327_v1 }
 0x636   :  { %1267 = vmatpush3.bf16.msra.mxu0 %v1293_v51 }
 0x637   :  { %1268 = vmatprep.subr.bf16.mxu0 %v1327_v1  ;;  %v704_v1 = vrot.slane %v1398_v4, %v496_v17  ;;  %v270_v17 = vmul.f32 %v269_v62, %v1513_v11 }
 0x63a   :  { %1269 = vmatpush3.bf16.msra.mxu0 %v1294_v29 }
 0x6d8   :  { %v1591_v12 = vpop.f32.mrf.mxu1 }
 0x6da   :  { %v1228_v16 = vpop.f32.mrf.mxu1 }
 0x6dc   :  { %v698_v21 = vpop.f32.mrf.mxu1  ;;  %v1596_v28 = vpop.f32.mrf.mxu0 }
 0x6de   :  { %v1229_v22 = vpop.f32.mrf.mxu1  ;;  %v1246_v32 = vpop.f32.mrf.mxu0 }
 0x6e0   :  { %v797_v24 = vpop.f32.mrf.mxu1  ;;  %v876_v33 = vpop.f32.mrf.mxu0 }
 0x6e1   :  { %v811_v13 = vsel %vm807_vm6, %v797_v24, -1e+30 }
 0x6e2   :  { %v1240_v25 = vpop.f32.mrf.mxu1  ;;  %v815_v26 = vsel %vm142_vm2, %v811_v13, -inf  ;;  %v1247_v36 = vpop.f32.mrf.mxu0 }
 0x6e3   :  { %816 = vmax.xlane.f32.xlu1 %v815_v26  ;;  %v41_v36 = vld [vmem:[%s1679_s2] sm:$0xff] }
 0x6e4   :  { %v800_v5 = vpop.f32.mrf.mxu1 }
 0x6e6   :  { %v1241_v23 = vpop.f32.mrf.mxu1 }
 0x76c   :  { %v817_v37 = vpop.xlane.xlu1 %816 }
 0x76d   :  { %v819_v59 = vsub.f32 %v811_v13, %v817_v37  ;;  %v1112_v37 = vld [vmem:[%s1680_s7] ss:$0 sm:$0xff] }
 0x76f   :  { %v822_v39 = vmul.f32 1.442695, %v819_v59 }
 0x771   :  { %1323 = vpow2.f32 %v822_v39 }
 0x77e   :  { %v1324_v34 = vpop.eup %1323 }
 0x77f   :  { %v827_v40 = vsel %vm142_vm2, %v1324_v34, 0.0 }
 0x780   :  { %828 = vadd.xlane.f32.xlu1 %v827_v40 }
 0x791   :  { %486 = vperm.xlu1 %1282, %v43_v58  }
 0x795   :  { %1283 = vset.pattern.permute.xlu1 %v1332_v41 }
 0x796   :  { %706 = vperm.xlu1 %1283, %v43_v58  }
 0x79a   :  { %1284 = vset.pattern.permute.xlu1 %v1333_v20  ;;  %v42_v20 = vld [vmem:[%s1679_s2 + $0x8] sm:$0xff] }
 0x79b   :  { %927 = vperm.xlu1 %1284, %v43_v58  }
 0x79f   :  { %1285 = vset.pattern.permute.xlu1 %v1331_v27 }
 0x7a0   :  { %940 = vperm.xlu1 %1285, %v43_v58   ;;  %v937_v58 = vsub.s32 4, %v1404_v6 }
 0x7a2   :  { %v938_v9 = vrot.slane %v1398_v4, %v937_v58  ;;  %v948_v16 = vrot.slane %v944_v0, %v937_v58 }
 0x809   :  { %v829_v38 = vpop.xlane.xlu1 %828 }
 0x80a   :  { %1325 = vrcp.f32 %v829_v38 }
 0x80d   :  { %v487_v52 = vpop.permute.xlu1 %486 }
 0x80e   :  { %v489_v60 = vmul.f32 %v487_v52, %v484_v54 }
 0x810   :  { %v490_v10 = vmul.f32 %v489_v60, %v1518_v35  ;;  %v491_v14 = vmul.f32 %v489_v60, %v1559_v2 }
 0x811   :  { %v707_v53 = vpop.permute.xlu1 %706 }
 0x812   :  { %v709_v63 = vmul.f32 %v707_v53, %v704_v1  ;;  %v492_v22 = vadd.f32 %v490_v10, %v270_v17  ;;  %v493_v24 = vadd.f32 %v491_v14, %v271_v19 }
 0x814   :  { %v710_v6 = vmul.f32 %v709_v63, %v1562_v30  ;;  %v711_v15 = vmul.f32 %v709_v63, %v1591_v12  ;;  %v1067_v12 = vld [vmem:[%s1678_s8] sm:$0x1] }
 0x815   :  { %v1076_v33 = vsub.f32 1.0, %v1067_v12  ;;  %v1072_v59 = vrot.slane %v1067_v12, %v1412_v8 }
 0x816   :  { %v928_v56 = vpop.permute.xlu1 %927  ;;  %v712_v25 = vadd.f32 %v710_v6, %v492_v22  ;;  %v713_v26 = vadd.f32 %v711_v15, %v493_v24 }
 0x817   :  { %v1326_v48 = vpop.eup %1325  ;;  %v930_v18 = vmul.f32 %v928_v56, %v925_v61 }
 0x818   :  { %v833_v49 = vmul.f32 %v1326_v48, %v1324_v34 }
 0x819   :  { %v931_v4 = vmul.f32 %v930_v18, %v1596_v28  ;;  %v1081_v28 = vrot.slane %v1076_v33, %v1412_v8 }
 0x81a   :  { %v835_v50 = vpack.c.bf16 %v833_v49, %v833_v49 }
 0x81b   :  { %v941_v3 = vpop.permute.xlu1 %940  ;;  %v933_v23 = vadd.f32 %v931_v4, %v712_v25  ;;  %v1083_v40 = vmul.f32 %v1081_v28, %v41_v36  ;;  %v1084_v46 = vmul.f32 %v1081_v28, %v42_v20 }
 0x81c   :  { %1251 = vmatmul.mubr.msk.bf16.vlgmr.msra.gmra.mxu1 %vm142_vm2, %v835_v50  ;;  %v943_v21 = vmul.f32 %v941_v3, %v938_v9 }
 0x81e   :  { %v949_v35 = vadd.f32 %v948_v16, %v943_v21 }
 0x820   :  { %v950_v31 = vmul.f32 %v949_v35, %v933_v23 }
 0x8dc   :  { %v916_v13 = vpop.f32.mrf.mxu1 }
 0x8dd   :  { %v932_v2 = vmul.f32 %v930_v18, %v916_v13 }
 0x8de   :  { %v1252_v5 = vpop.f32.mrf.mxu1 }
 0x8df   :  { %v934_v11 = vadd.f32 %v932_v2, %v713_v26 }
 0x8e0   :  { %v919_v7 = vpop.f32.mrf.mxu1 }
 0x8e1   :  { %v951_v27 = vmul.f32 %v949_v35, %v934_v11 }
 0x8e2   :  { %v1253_v30 = vpop.f32.mrf.mxu1 }
 0x8e3   :  { %v952_v32 = vpack.c.bf16 %v951_v27, %v950_v31 }
 0x8e5   :  { %1271 = vmatmul.mubr.bf16.vlgmr.msra.gmra.mxu0 %v952_v32 }
 0x9a5   :  { %v1051_v39 = vpop.f32.mrf.mxu0 }
 0x9a6   :  { %v1065_v34 = vadd.f32 %v1112_v37, %v1051_v39 }
 0x9a7   :  { %v1272_v41 = vpop.f32.mrf.mxu0 }
 0x9a8   :  { %v1074_v42 = vmul.f32 %v1072_v59, %v1065_v34 }
 0x9a9   :  { %v1054_v43 = vpop.f32.mrf.mxu0 }
 0x9aa   :  { %v1085_v44 = vadd.f32 %v1083_v40, %v1074_v42  ;;  %v1066_v45 = vadd.f32 %v1112_v37, %v1054_v43 }
 0x9ab   :  { %v1273_v47 = vpop.f32.mrf.mxu0 }
 0x9ac   :  { %1087 = vst [vmem:[%s1681_s9] sm:$0xff] %v1085_v44  ;;  %v1075_v38 = vmul.f32 %v1072_v59, %v1066_v45 }
 0x9ae   :  { %v1086_v8 = vadd.f32 %v1084_v46, %v1075_v38 }
 0x9b0   :  { %1088 = vst [vmem:[%s1681_s9 + $0x8] sm:$0xff] %v1086_v8 }

</bundles_post_ra>
